<compile_context>
chip_gen: v7x
topology: tpu7x:2x2x1
jax: 0.10.0
libtpu: 0.0.40
codegen_flags: <defaults>
</compile_context>

<pallas_src>
import functools
import math

import jax
import jax.numpy as jnp
from jax.experimental import pallas as pl
from jax.experimental.pallas import tpu as pltpu

_TM_CAP = 1024   # residual-stream rows per M tile (729/736 tokens fit in one tile)
_TN_CAP = 1152   # output columns per N tile
_TK_CAP = 1152   # contraction depth per K tile (fc2's K=4352 -> 4 x 1088 steps)


def _round_up(x, m):
    return (x + m - 1) // m * m


def _pick_tile(dim, unit, cap):
    """Largest multiple of `unit` (<= cap) that divides `dim`; else full `dim`."""
    best = None
    t = unit
    limit = min(dim, cap)
    while t <= limit:
        if dim % t == 0:
            best = t
        t += unit
    return best if best is not None else dim


@functools.lru_cache(maxsize=None)
def _vmem_limit():
    """Generation-aware VMEM budget (v7x has 64 MiB, v5e/v6e have 128 MiB)."""
    cap = 64 * 1024 * 1024          # conservative fallback = v7x physical
    try:
        cap = int(pltpu.get_tpu_info().vmem_capacity_bytes)
    except Exception:
        pass
    return min(cap * 7 // 10, 64 * 1024 * 1024)


# ----------------------------------------------------------------------------
# Pallas kernels
# ----------------------------------------------------------------------------
def _linear_kernel(*refs, activation, has_residual, has_ln, ln_eps):
    idx = 0
    x_ref = refs[idx]; idx += 1
    w_ref = refs[idx]; idx += 1
    b_ref = refs[idx]; idx += 1
    if has_ln:
        g_ref = refs[idx]; idx += 1
        bb_ref = refs[idx]; idx += 1
    if has_residual:
        r_ref = refs[idx]; idx += 1
    o_ref = refs[idx]; idx += 1
    acc_ref = refs[idx]

    k = pl.program_id(2)

    @pl.when(k == 0)
    def _():
        acc_ref[...] = jnp.zeros_like(acc_ref)

    if has_ln:
        # Fused LayerNorm prologue (K is untiled for these calls).  Recomputed per
        # N tile; the VPU/XLU work hides under the MXU dot for these tile shapes.
        x = x_ref[...].astype(jnp.float32)
        mean = jnp.mean(x, axis=-1, keepdims=True)
        xc = x - mean
        var = jnp.mean(xc * xc, axis=-1, keepdims=True)
        xn = xc * jax.lax.rsqrt(var + ln_eps)
        xin = (xn * g_ref[...] + bb_ref[...]).astype(jnp.bfloat16)
    else:
        xin = x_ref[...].astype(jnp.bfloat16)

    acc_ref[...] += jnp.dot(xin, w_ref[...].astype(jnp.bfloat16),
                            preferred_element_type=jnp.float32)

    @pl.when(k == pl.num_programs(2) - 1)
    def _():
        out = acc_ref[...] + b_ref[...].astype(jnp.float32)
        if activation == "gelu_tanh":
            c = math.sqrt(2.0 / math.pi)
            out = 0.5 * out * (1.0 + jnp.tanh(c * (out + 0.044715 * out * out * out)))
        if has_residual:
            out = out + r_ref[...].astype(jnp.float32)
        o_ref[...] = out.astype(o_ref.dtype)


def _layernorm_kernel(x_ref, g_ref, b_ref, o_ref, *, eps):
    x = x_ref[...].astype(jnp.float32)
    mean = jnp.mean(x, axis=-1, keepdims=True)
    var = jnp.mean(jnp.square(x - mean), axis=-1, keepdims=True)
    y = (x - mean) * jax.lax.rsqrt(var + eps)
    o_ref[...] = (y * g_ref[...] + b_ref[...]).astype(o_ref.dtype)


def _attn_kernel(qkv_ref, o_ref, *, slot, n_real):
    """One (batch, head) pair.

    qkv_ref: (1, Np, 3*slot) bf16 laid out [q | k | v], each slot lanes wide
             (slot = head_dim zero-padded to 128; softmax scale already folded
              into the q weights).
    o_ref:   (1, Np, slot) bf16.
    """
    np_ = qkv_ref.shape[1]
    q = qkv_ref[0, :, 0:slot]                 # (Np, slot) bf16, lane-aligned
    k = qkv_ref[0, :, slot:2 * slot]
    v = qkv_ref[0, :, 2 * slot:3 * slot]

    # q @ k^T as a contraction on the last dims (zero-padded dims contribute 0)
    s = jax.lax.dot_general(q, k, (((1,), (1,)), ((), ())),
                            preferred_element_type=jnp.float32)   # (Np, Np) f32
    if n_real < np_:                          # mask padded key tokens
        col = jax.lax.broadcasted_iota(jnp.int32, s.shape, 1)
        s = jnp.where(col < n_real, s, -1e30)

    m = jnp.max(s, axis=-1, keepdims=True)
    p = jnp.exp(s - m)
    l = jnp.sum(p, axis=-1, keepdims=True)
    o = jnp.dot(p.astype(jnp.bfloat16), v, preferred_element_type=jnp.float32)
    o = o * pl.reciprocal(l, approx=True)     # EUP, not an (N,N) divide
    o_ref[0, :, :] = o.astype(o_ref.dtype)


# ----------------------------------------------------------------------------
# Pallas wrappers
# ----------------------------------------------------------------------------
def pallas_linear(x, w, b, *, activation=None, residual=None, ln=None,
                  ln_eps=1e-5, out_dtype=jnp.float32):
    """y = act(ln?(x) @ w + b) [+ residual].  x:(M,K), w:(K,N) bf16, b:(N,)."""
    M, K = x.shape
    Kw, N = w.shape
    assert K == Kw, (K, Kw)

    tm = _pick_tile(M, 8, _TM_CAP)
    tn = _pick_tile(N, 128, _TN_CAP)
    tk = K if ln is not None else _pick_tile(K, 128, _TK_CAP)
    if ln is not None:
        assert tk == K, "fused LayerNorm requires an untiled contraction dim"

    in_specs = [
        pl.BlockSpec((tm, tk), lambda i, j, k: (i, k)),
        pl.BlockSpec((tk, tn), lambda i, j, k: (k, j)),
        pl.BlockSpec((1, tn), lambda i, j, k: (0, j)),
    ]
    inputs = [x, w, b.reshape(1, N)]
    if ln is not None:
        g, bb = ln
        in_specs += [pl.BlockSpec((1, K), lambda i, j, k: (0, 0)),
                     pl.BlockSpec((1, K), lambda i, j, k: (0, 0))]
        inputs += [g.reshape(1, K), bb.reshape(1, K)]
    if residual is not None:
        # same block index as the output -> fetched once per (i, j) tile
        in_specs.append(pl.BlockSpec((tm, tn), lambda i, j, k: (i, j)))
        inputs.append(residual)

    return pl.pallas_call(
        functools.partial(_linear_kernel, activation=activation,
                          has_residual=residual is not None,
                          has_ln=ln is not None, ln_eps=ln_eps),
        out_shape=jax.ShapeDtypeStruct((M, N), out_dtype),
        grid=(M // tm, N // tn, K // tk),
        in_specs=in_specs,
        out_specs=pl.BlockSpec((tm, tn), lambda i, j, k: (i, j)),
        scratch_shapes=[pltpu.VMEM((tm, tn), jnp.float32)],
        compiler_params=pltpu.CompilerParams(
            dimension_semantics=("parallel", "parallel", "arbitrary"),
            vmem_limit_bytes=_vmem_limit()),
    )(*inputs)


def pallas_layernorm(x, g, b, *, eps=1e-5, out_dtype=jnp.float32):
    """x: (M, D); gamma/beta: (D,). M must be a multiple of 8 (it is: Np-padded)."""
    M, D = x.shape
    tm = _pick_tile(M, 8, 512)
    return pl.pallas_call(
        functools.partial(_layernorm_kernel, eps=eps),
        out_shape=jax.ShapeDtypeStruct((M, D), out_dtype),
        grid=(M // tm,),
        in_specs=[
            pl.BlockSpec((tm, D), lambda i: (i, 0)),
            pl.BlockSpec((1, D), lambda i: (0, 0)),
            pl.BlockSpec((1, D), lambda i: (0, 0)),
        ],
        out_specs=pl.BlockSpec((tm, D), lambda i: (i, 0)),
        compiler_params=pltpu.CompilerParams(
            dimension_semantics=("parallel",),
            vmem_limit_bytes=_vmem_limit()),
    )(x, g.reshape(1, D), b.reshape(1, D))


def pallas_attention(qkv, *, num_heads, slot, n_real):
    """qkv: (B, Np, num_heads*3*slot) bf16, head-major [h][q|k|v] with 128-wide
    head slots -> output (B, Np, num_heads*slot) bf16 (padded head columns are 0)."""
    B, Np, W = qkv.shape
    assert W == num_heads * 3 * slot, (W, num_heads, slot)
    return pl.pallas_call(
        functools.partial(_attn_kernel, slot=slot, n_real=n_real),
        out_shape=jax.ShapeDtypeStruct((B, Np, num_heads * slot), qkv.dtype),
        grid=(B, num_heads),
        in_specs=[pl.BlockSpec((1, Np, 3 * slot), lambda b, h: (b, 0, h))],
        out_specs=pl.BlockSpec((1, Np, slot), lambda b, h: (b, 0, h)),
        compiler_params=pltpu.CompilerParams(
            dimension_semantics=("parallel", "parallel"),
            vmem_limit_bytes=_vmem_limit()),
    )(qkv)


# ----------------------------------------------------------------------------
# Model forward (structure mirrors the PyTorch module)
# ----------------------------------------------------------------------------
def vit_forward(x, params, *, num_heads, patch=14):
    # TODO(synk): the optional FlashSelfAttention branch of the torch module is not
    # implemented; this follows the default F.scaled_dot_product_attention path.
    B, C, HP, WP = x.shape
    h, w = HP // patch, WP // patch
    N = h * w
    Np = _round_up(N, 8)            # pad tokens ONCE; padded keys masked in attention
    patch_dim = C * patch * patch

    D = params["patch_w"].shape[1]
    pk_pad = params["patch_w"].shape[0]          # patch_dim padded to 128-multiple
    slot = params["blocks"][0]["proj_w"].shape[0] // num_heads if params["blocks"] else 128
    M = B * Np

    # LinearPatchEmbedding: reshape/permute glue + Pallas linear (pos-embed fused)
    xp = x.reshape(B, C, h, patch, w, patch)
    xp = jnp.transpose(xp, (0, 2, 4, 1, 3, 5)).reshape(B, N, patch_dim)
    xp = jnp.pad(xp, ((0, 0), (0, Np - N), (0, pk_pad - patch_dim))).astype(jnp.bfloat16)

    pos = jnp.pad(params["pos_embed"], ((0, 0), (0, Np - N), (0, 0)))
    pos_full = jnp.broadcast_to(pos, (B, Np, D)).reshape(M, D).astype(jnp.float32)

    t = pallas_linear(xp.reshape(M, pk_pad), params["patch_w"], params["patch_b"],
                      residual=pos_full, out_dtype=jnp.float32)   # (M, D) f32 stream

    for blk in params["blocks"]:
        # --- attention branch:  t = t + proj(attn(norm1(t))) ---
        qkv = pallas_linear(t, blk["qkv_w"], blk["qkv_b"],
                            ln=(blk["ln1_g"], blk["ln1_b"]),
                            out_dtype=jnp.bfloat16)               # (M, H*3*slot)
        attn = pallas_attention(qkv.reshape(B, Np, num_heads * 3 * slot),
                                num_heads=num_heads, slot=slot, n_real=N)
        t = pallas_linear(attn.reshape(M, num_heads * slot),
                          blk["proj_w"], blk["proj_b"],
                          residual=t, out_dtype=jnp.float32)      # residual fused

        # --- MLP branch:  t = t + fc2(gelu(fc1(norm2(t)))) ---
        y = pallas_linear(t, blk["fc1_w"], blk["fc1_b"],
                          ln=(blk["ln2_g"], blk["ln2_b"]),
                          activation="gelu_tanh", out_dtype=jnp.bfloat16)
        t = pallas_linear(y, blk["fc2_w"], blk["fc2_b"],
                          residual=t, out_dtype=jnp.float32)      # residual fused

    out = pallas_layernorm(t, params["ln_g"], params["ln_b"], out_dtype=jnp.float32)
    out = out.reshape(B, Np, D)
    return out[:, :N] if Np != N else out


# ----------------------------------------------------------------------------
# Parameters: deterministic synthetic init + one-time preparation
# ----------------------------------------------------------------------------
def init_params(key, *, embed_dim, depth, mlp_hidden, patch_dim, embed_len,
                dtype=jnp.float32):
    def kaiming(k, fan_in, fan_out):
        # kaiming_normal_(mode='fan_in', nonlinearity='relu'): std = sqrt(2/fan_in)
        return jax.random.normal(k, (fan_in, fan_out), dtype) * math.sqrt(2.0 / fan_in)

    keys = iter(jax.random.split(key, 4 + 6 * depth))
    params = {
        "patch_w": kaiming(next(keys), patch_dim, embed_dim),
        "patch_b": jnp.zeros((embed_dim,), dtype),
        "pos_embed": jax.random.normal(next(keys), (1, embed_len, embed_dim), dtype) * 0.02,
        "ln_g": jnp.ones((embed_dim,), dtype),
        "ln_b": jnp.zeros((embed_dim,), dtype),
        "blocks": [],
    }
    for _ in range(depth):
        blk = {
            "ln1_g": jnp.ones((embed_dim,), dtype),
            "ln1_b": jnp.zeros((embed_dim,), dtype),
            # qkv columns ordered [q|k|v][head][head_dim] (matches torch layout)
            "qkv_w": kaiming(next(keys), embed_dim, 3 * embed_dim),
            "qkv_b": jax.random.normal(next(keys), (3 * embed_dim,), dtype) * 0.02,
            "proj_w": kaiming(next(keys), embed_dim, embed_dim),
            "proj_b": jnp.zeros((embed_dim,), dtype),
            "ln2_g": jnp.ones((embed_dim,), dtype),
            "ln2_b": jnp.zeros((embed_dim,), dtype),
            "fc1_w": kaiming(next(keys), embed_dim, mlp_hidden),
            "fc1_b": jnp.zeros((mlp_hidden,), dtype),
            "fc2_w": kaiming(next(keys), mlp_hidden, embed_dim),
            "fc2_b": jnp.zeros((embed_dim,), dtype),
        }
        params["blocks"].append(blk)
    return params


def prepare_params(params, *, num_heads, weight_dtype=jnp.bfloat16):
    """One-time weight preparation so the forward does no per-call pads/casts:
      * qkv_w/qkv_b: permute columns to head-major [head][q|k|v], zero-pad each
        head slot head_dim -> 128 (lane aligned), fold the 1/sqrt(head_dim)
        softmax scale into the q columns, cast to bf16.
      * proj_w: insert matching zero rows per head so it consumes the padded
        attention output directly.
      * fc1/fc2: zero-pad the MLP hidden dim to a multiple of 256 (exact).
      * patch_w: zero-pad the 588-wide input dim to a multiple of 128.
    All padding is with zeros, so results are numerically identical."""
    D = params["patch_w"].shape[1]
    hd = D // num_heads
    slot = _round_up(hd, 128)
    scale = 1.0 / math.sqrt(hd)

    out = dict(params)
    pk = params["patch_w"].shape[0]
    pk_pad = _round_up(pk, 128)
    out["patch_w"] = jnp.pad(params["patch_w"],
                             ((0, pk_pad - pk), (0, 0))).astype(weight_dtype)

    blocks = []
    for blk in params["blocks"]:
        b = dict(blk)

        # qkv -> head-major, padded, scale folded into q
        qw = blk["qkv_w"].reshape(D, 3, num_heads, hd)
        qb = blk["qkv_b"].reshape(3, num_heads, hd)
        qw = qw.at[:, 0].multiply(scale)
        qb = qb.at[0].multiply(scale)
        qw = jnp.pad(qw, ((0, 0), (0, 0), (0, 0), (0, slot - hd)))
        qb = jnp.pad(qb, ((0, 0), (0, 0), (0, slot - hd)))
        b["qkv_w"] = jnp.transpose(qw, (0, 2, 1, 3)).reshape(
            D, num_heads * 3 * slot).astype(weight_dtype)
        b["qkv_b"] = jnp.transpose(qb, (1, 0, 2)).reshape(num_heads * 3 * slot)

        # proj: zero rows for the padded head columns
        pj = blk["proj_w"].reshape(num_heads, hd, D)
        pj = jnp.pad(pj, ((0, 0), (0, slot - hd), (0, 0)))
        b["proj_w"] = pj.reshape(num_heads * slot, D).astype(weight_dtype)

        # MLP hidden padded to a multiple of 256
        hidden = blk["fc1_w"].shape[1]
        hp = _round_up(hidden, 256)
        b["fc1_w"] = jnp.pad(blk["fc1_w"], ((0, 0), (0, hp - hidden))).astype(weight_dtype)
        b["fc1_b"] = jnp.pad(blk["fc1_b"], ((0, hp - hidden),))
        b["fc2_w"] = jnp.pad(blk["fc2_w"], ((0, hp - hidden), (0, 0))).astype(weight_dtype)

        blocks.append(b)
    out["blocks"] = blocks
    return out


if __name__ == "__main__":
    # Small config consistent with the module's structure
    # (full-size would be: embed_dim=1152, heads=16, hidden=4304, depth=27,
    #  input (B, 3, 378, 378) -> 729 tokens of dim 588).
    PATCH = 14
    B, C = 2, 3
    H_IMG = W_IMG = 2 * PATCH          # -> 2x2 = 4 patches (embed_len = 4)
    EMBED_DIM = 128
    NUM_HEADS = 4                      # head_dim = 32 (padded to 128-wide slots)
    MLP_HIDDEN = 256
    DEPTH = 2
    PATCH_DIM = C * PATCH * PATCH      # 588, same as the reference module
    EMBED_LEN = (H_IMG // PATCH) * (W_IMG // PATCH)

    key = jax.random.PRNGKey(0)
    kx, kp = jax.random.split(key)
    x = jax.random.normal(kx, (B, C, H_IMG, W_IMG), jnp.float32)
    raw_params = init_params(kp, embed_dim=EMBED_DIM, depth=DEPTH,
                             mlp_hidden=MLP_HIDDEN, patch_dim=PATCH_DIM,
                             embed_len=EMBED_LEN)
    params = prepare_params(raw_params, num_heads=NUM_HEADS)

    fwd = jax.jit(functools.partial(vit_forward, num_heads=NUM_HEADS, patch=PATCH))
    out = fwd(x, params)
    jax.block_until_ready(out)
    assert out.shape == (B, EMBED_LEN, EMBED_DIM), out.shape
    assert bool(jnp.all(jnp.isfinite(out)))
    print("KERNEL_OK")
</pallas_src>

<mosaic_0001>
module attributes {stable_mosaic.version = 11 : i64} {
  func.func @_linear_kernel(%arg0: i32, %arg1: i32, %arg2: i32, %arg3: memref<16x640xbf16, #tpu.memory_space<vmem>>, %arg4: memref<640x128xbf16, #tpu.memory_space<vmem>>, %arg5: memref<1x128xf32, #tpu.memory_space<vmem>>, %arg6: memref<16x128xf32, #tpu.memory_space<vmem>>, %arg7: memref<16x128xf32, #tpu.memory_space<vmem>>, %arg8: memref<16x128xf32, #tpu.memory_space<vmem>>) attributes {dimension_semantics = [#tpu.dimension_semantics<parallel>, #tpu.dimension_semantics<parallel>, #tpu.dimension_semantics<arbitrary>], iteration_bounds = array<i64: 1, 1, 1>, scalar_prefetch = 0 : i64, scratch_operands = 1 : i64, tpu.core_type = #tpu.core_type<tc>, window_params = [{transform_indices = @transform_0, window_bounds = array<i64: 16, 640>}, {transform_indices = @transform_1, window_bounds = array<i64: 640, 128>}, {transform_indices = @transform_2, window_bounds = array<i64: 1, 128>}, {transform_indices = @transform_3, window_bounds = array<i64: 16, 128>}, {transform_indices = @transform_4, window_bounds = array<i64: 16, 128>}]} {
    %c0_i32 = arith.constant 0 : i32
    %0 = arith.cmpi eq, %arg2, %c0_i32 : i32
    %1 = arith.extui %0 : i1 to i32
    %c0_i32_0 = arith.constant 0 : i32
    %2 = arith.cmpi ne, %1, %c0_i32_0 : i32
    scf.if %2 {
      %cst_10 = arith.constant 0.000000e+00 : f32
      %12 = vector.broadcast %cst_10 : f32 to vector<16x128xf32>
      %c0_11 = arith.constant 0 : index
      %c0_12 = arith.constant 0 : index
      %13 = vector.load %arg8[%c0_11, %c0_12] : memref<16x128xf32, #tpu.memory_space<vmem>>, vector<16x128xf32>
      tpu.vector_store %arg8[%c0_11, %c0_12], %12 {strides = array<i32>} : memref<16x128xf32, #tpu.memory_space<vmem>>, vector<16x128xf32>,
    } else {
    }
    %c0 = arith.constant 0 : index
    %c0_1 = arith.constant 0 : index
    %3 = vector.load %arg3[%c0, %c0_1] : memref<16x640xbf16, #tpu.memory_space<vmem>>, vector<16x640xbf16>
    %c0_2 = arith.constant 0 : index
    %c0_3 = arith.constant 0 : index
    %4 = vector.load %arg8[%c0_2, %c0_3] : memref<16x128xf32, #tpu.memory_space<vmem>>, vector<16x128xf32>
    %c0_4 = arith.constant 0 : index
    %c0_5 = arith.constant 0 : index
    %5 = vector.load %arg4[%c0_4, %c0_5] : memref<640x128xbf16, #tpu.memory_space<vmem>>, vector<640x128xbf16>
    %cst = arith.constant dense<0.000000e+00> : vector<16x128xf32>
    %6 = tpu.matmul %3, %5, %cst {dimension_numbers = #tpu.dot_dimension_numbers<[1], [0], [0], [1], [0, 0, 1, 1], [], []>} : vector<16x640xbf16>, vector<640x128xbf16>, vector<16x128xf32> -> vector<16x128xf32>
    %7 = arith.addf %4, %6 : vector<16x128xf32>
    %c0_6 = arith.constant 0 : index
    %c0_7 = arith.constant 0 : index
    %8 = vector.load %arg8[%c0_6, %c0_7] : memref<16x128xf32, #tpu.memory_space<vmem>>, vector<16x128xf32>
    tpu.vector_store %arg8[%c0_6, %c0_7], %7 {strides = array<i32>} : memref<16x128xf32, #tpu.memory_space<vmem>>, vector<16x128xf32>,
    %c0_i32_8 = arith.constant 0 : i32
    %9 = arith.cmpi eq, %arg2, %c0_i32_8 : i32
    %10 = arith.extui %9 : i1 to i32
    %c0_i32_9 = arith.constant 0 : i32
    %11 = arith.cmpi ne, %10, %c0_i32_9 : i32
    scf.if %11 {
      %c0_10 = arith.constant 0 : index
      %c0_11 = arith.constant 0 : index
      %12 = vector.load %arg8[%c0_10, %c0_11] : memref<16x128xf32, #tpu.memory_space<vmem>>, vector<16x128xf32>
      %c0_12 = arith.constant 0 : index
      %c0_13 = arith.constant 0 : index
      %13 = vector.load %arg5[%c0_12, %c0_13] : memref<1x128xf32, #tpu.memory_space<vmem>>, vector<1x128xf32>
      %14 = vector.broadcast %13 : vector<1x128xf32> to vector<16x128xf32>
      %15 = arith.addf %12, %14 : vector<16x128xf32>
      %c0_14 = arith.constant 0 : index
      %c0_15 = arith.constant 0 : index
      %16 = vector.load %arg6[%c0_14, %c0_15] : memref<16x128xf32, #tpu.memory_space<vmem>>, vector<16x128xf32>
      %17 = arith.addf %15, %16 : vector<16x128xf32>
      %c0_16 = arith.constant 0 : index
      %c0_17 = arith.constant 0 : index
      %18 = vector.load %arg7[%c0_16, %c0_17] : memref<16x128xf32, #tpu.memory_space<vmem>>, vector<16x128xf32>
      tpu.vector_store %arg7[%c0_16, %c0_17], %17 {strides = array<i32>} : memref<16x128xf32, #tpu.memory_space<vmem>>, vector<16x128xf32>,
    } else {
    }
    return
  }
  func.func @transform_0(%arg0: i32, %arg1: i32, %arg2: i32) -> (i32, i32) {
    %c0_i32 = arith.constant 0 : i32
    return %arg0, %arg2 : i32, i32
  }
  func.func @transform_1(%arg0: i32, %arg1: i32, %arg2: i32) -> (i32, i32) {
    %c0_i32 = arith.constant 0 : i32
    return %arg2, %arg1 : i32, i32
  }
  func.func @transform_2(%arg0: i32, %arg1: i32, %arg2: i32) -> (i32, i32) {
    %c0_i32 = arith.constant 0 : i32
    %c0_i32_0 = arith.constant 0 : i32
    return %c0_i32, %arg1 : i32, i32
  }
  func.func @transform_3(%arg0: i32, %arg1: i32, %arg2: i32) -> (i32, i32) {
    %c0_i32 = arith.constant 0 : i32
    return %arg0, %arg1 : i32, i32
  }
  func.func @transform_4(%arg0: i32, %arg1: i32, %arg2: i32) -> (i32, i32) {
    %c0_i32 = arith.constant 0 : i32
    return %arg0, %arg1 : i32, i32
  }
}

module attributes {stable_mosaic.version = 11 : i64} {
  func.func @_attn_kernel(%arg0: i32, %arg1: i32, %arg2: memref<1x8x384xbf16, #tpu.memory_space<vmem>>, %arg3: memref<1x8x128xbf16, #tpu.memory_space<vmem>>) attributes {dimension_semantics = [#tpu.dimension_semantics<parallel>, #tpu.dimension_semantics<parallel>], iteration_bounds = array<i64: 2, 4>, scalar_prefetch = 0 : i64, scratch_operands = 0 : i64, tpu.core_type = #tpu.core_type<tc>, window_params = [{transform_indices = @transform_0, window_bounds = array<i64: 1, 8, 384>}, {transform_indices = @transform_1, window_bounds = array<i64: 1, 8, 128>}]} {
    %c0 = arith.constant 0 : index
    %c0_0 = arith.constant 0 : index
    %c0_1 = arith.constant 0 : index
    %0 = vector.load %arg2[%c0, %c0_0, %c0_1] : memref<1x8x384xbf16, #tpu.memory_space<vmem>>, vector<1x8x128xbf16>
    %1 = vector.shape_cast %0 : vector<1x8x128xbf16> to vector<8x128xbf16>
    %c0_2 = arith.constant 0 : index
    %c0_3 = arith.constant 0 : index
    %c128 = arith.constant 128 : index
    %2 = vector.load %arg2[%c0_2, %c0_3, %c128] : memref<1x8x384xbf16, #tpu.memory_space<vmem>>, vector<1x8x128xbf16>
    %3 = vector.shape_cast %2 : vector<1x8x128xbf16> to vector<8x128xbf16>
    %c0_4 = arith.constant 0 : index
    %c0_5 = arith.constant 0 : index
    %c256 = arith.constant 256 : index
    %4 = vector.load %arg2[%c0_4, %c0_5, %c256] : memref<1x8x384xbf16, #tpu.memory_space<vmem>>, vector<1x8x128xbf16>
    %5 = vector.shape_cast %4 : vector<1x8x128xbf16> to vector<8x128xbf16>
    %cst = arith.constant dense<0.000000e+00> : vector<8x8xf32>
    %6 = tpu.matmul %1, %3, %cst {dimension_numbers = #tpu.dot_dimension_numbers<[1], [1], [0], [0], [0, 0, 1, 0], [], []>} : vector<8x128xbf16>, vector<8x128xbf16>, vector<8x8xf32> -> vector<8x8xf32>
    %7 = tpu.iota {dimensions = array<i32: 1>} : vector<8x8xi32>
    %c4_i32 = arith.constant 4 : i32
    %8 = vector.broadcast %c4_i32 : i32 to vector<8x8xi32>
    %9 = arith.cmpi slt, %7, %8 : vector<8x8xi32>
    %cst_6 = arith.constant -1.000000e+30 : f32
    %10 = vector.broadcast %cst_6 : f32 to vector<8x8xf32>
    %11 = arith.select %9, %6, %10 : vector<8x8xi1>, vector<8x8xf32>
    %cst_7 = arith.constant dense<0xFF800000> : vector<8xf32>
    %12 = vector.multi_reduction <maximumf>, %11, %cst_7 [1] : vector<8x8xf32> to vector<8xf32>
    %13 = vector.shape_cast %12 : vector<8xf32> to vector<8x1xf32>
    %14 = vector.broadcast %13 : vector<8x1xf32> to vector<8x8xf32>
    %15 = arith.subf %11, %14 : vector<8x8xf32>
    %16 = math.exp %15 : vector<8x8xf32>
    %cst_8 = arith.constant dense<0.000000e+00> : vector<8xf32>
    %17 = vector.multi_reduction <add>, %16, %cst_8 [1] : vector<8x8xf32> to vector<8xf32>
    %18 = vector.shape_cast %17 : vector<8xf32> to vector<8x1xf32>
    %19 = arith.truncf %16 : vector<8x8xf32> to vector<8x8xbf16>
    %cst_9 = arith.constant dense<0.000000e+00> : vector<8x128xf32>
    %20 = tpu.matmul %19, %5, %cst_9 {dimension_numbers = #tpu.dot_dimension_numbers<[1], [0], [0], [1], [0, 0, 1, 1], [], []>} : vector<8x8xbf16>, vector<8x128xbf16>, vector<8x128xf32> -> vector<8x128xf32>
    %21 = tpu.reciprocal %18 {approx = true} : vector<8x1xf32> -> vector<8x1xf32>
    %22 = vector.broadcast %21 : vector<8x1xf32> to vector<8x128xf32>
    %23 = arith.mulf %20, %22 : vector<8x128xf32>
    %24 = arith.truncf %23 : vector<8x128xf32> to vector<8x128xbf16>
    %c0_10 = arith.constant 0 : index
    %c0_11 = arith.constant 0 : index
    %c0_12 = arith.constant 0 : index
    %25 = vector.load %arg3[%c0_10, %c0_11, %c0_12] : memref<1x8x128xbf16, #tpu.memory_space<vmem>>, vector<1x8x128xbf16>
    %26 = vector.shape_cast %25 : vector<1x8x128xbf16> to vector<8x128xbf16>
    %27 = vector.shape_cast %24 : vector<8x128xbf16> to vector<1x8x128xbf16>
    tpu.vector_store %arg3[%c0_10, %c0_11, %c0_12], %27 {strides = array<i32>} : memref<1x8x128xbf16, #tpu.memory_space<vmem>>, vector<1x8x128xbf16>,
    return
  }
  func.func @transform_0(%arg0: i32, %arg1: i32) -> (i32, i32, i32) {
    %c0_i32 = arith.constant 0 : i32
    %c0_i32_0 = arith.constant 0 : i32
    return %arg0, %c0_i32, %arg1 : i32, i32, i32
  }
  func.func @transform_1(%arg0: i32, %arg1: i32) -> (i32, i32, i32) {
    %c0_i32 = arith.constant 0 : i32
    %c0_i32_0 = arith.constant 0 : i32
    return %arg0, %c0_i32, %arg1 : i32, i32, i32
  }
}

module attributes {stable_mosaic.version = 11 : i64} {
  func.func @_linear_kernel(%arg0: i32, %arg1: i32, %arg2: i32, %arg3: memref<16x128xf32, #tpu.memory_space<vmem>>, %arg4: memref<128x768xbf16, #tpu.memory_space<vmem>>, %arg5: memref<1x768xf32, #tpu.memory_space<vmem>>, %arg6: memref<1x128xf32, #tpu.memory_space<vmem>>, %arg7: memref<1x128xf32, #tpu.memory_space<vmem>>, %arg8: memref<16x768xbf16, #tpu.memory_space<vmem>>, %arg9: memref<16x768xf32, #tpu.memory_space<vmem>>) attributes {dimension_semantics = [#tpu.dimension_semantics<parallel>, #tpu.dimension_semantics<parallel>, #tpu.dimension_semantics<arbitrary>], iteration_bounds = array<i64: 1, 2, 1>, scalar_prefetch = 0 : i64, scratch_operands = 1 : i64, tpu.core_type = #tpu.core_type<tc>, window_params = [{transform_indices = @transform_0, window_bounds = array<i64: 16, 128>}, {transform_indices = @transform_1, window_bounds = array<i64: 128, 768>}, {transform_indices = @transform_2, window_bounds = array<i64: 1, 768>}, {pipeline_mode = #tpu.pipeline_mode<synchronous>, transform_indices = @transform_3, window_bounds = array<i64: 1, 128>}, {pipeline_mode = #tpu.pipeline_mode<synchronous>, transform_indices = @transform_4, window_bounds = array<i64: 1, 128>}, {transform_indices = @transform_5, window_bounds = array<i64: 16, 768>}]} {
    %c0_i32 = arith.constant 0 : i32
    %0 = arith.cmpi eq, %arg2, %c0_i32 : i32
    %1 = arith.extui %0 : i1 to i32
    %c0_i32_0 = arith.constant 0 : i32
    %2 = arith.cmpi ne, %1, %c0_i32_0 : i32
    scf.if %2 {
      %cst_19 = arith.constant 0.000000e+00 : f32
      %35 = vector.broadcast %cst_19 : f32 to vector<16x768xf32>
      %c0_20 = arith.constant 0 : index
      %c0_21 = arith.constant 0 : index
      %36 = vector.load %arg9[%c0_20, %c0_21] : memref<16x768xf32, #tpu.memory_space<vmem>>, vector<16x768xf32>
      tpu.vector_store %arg9[%c0_20, %c0_21], %35 {strides = array<i32>} : memref<16x768xf32, #tpu.memory_space<vmem>>, vector<16x768xf32>,
    } else {
    }
    %c0 = arith.constant 0 : index
    %c0_1 = arith.constant 0 : index
    %3 = vector.load %arg3[%c0, %c0_1] : memref<16x128xf32, #tpu.memory_space<vmem>>, vector<16x128xf32>
    %cst = arith.constant dense<0.000000e+00> : vector<16xf32>
    %4 = vector.multi_reduction <add>, %3, %cst [1] : vector<16x128xf32> to vector<16xf32>
    %5 = vector.shape_cast %4 : vector<16xf32> to vector<16x1xf32>
    %cst_2 = arith.constant 1.280000e+02 : f32
    %6 = vector.broadcast %cst_2 : f32 to vector<16x1xf32>
    %7 = arith.divf %5, %6 : vector<16x1xf32>
    %8 = vector.broadcast %7 : vector<16x1xf32> to vector<16x128xf32>
    %9 = arith.subf %3, %8 : vector<16x128xf32>
    %10 = arith.mulf %9, %9 : vector<16x128xf32>
    %cst_3 = arith.constant dense<0.000000e+00> : vector<16xf32>
    %11 = vector.multi_reduction <add>, %10, %cst_3 [1] : vector<16x128xf32> to vector<16xf32>
    %12 = vector.shape_cast %11 : vector<16xf32> to vector<16x1xf32>
    %cst_4 = arith.constant 1.280000e+02 : f32
    %13 = vector.broadcast %cst_4 : f32 to vector<16x1xf32>
    %14 = arith.divf %12, %13 : vector<16x1xf32>
    %cst_5 = arith.constant 9.99999974E-6 : f32
    %15 = vector.broadcast %cst_5 : f32 to vector<16x1xf32>
    %16 = arith.addf %14, %15 : vector<16x1xf32>
    %17 = math.rsqrt %16 : vector<16x1xf32>
    %18 = vector.broadcast %17 : vector<16x1xf32> to vector<16x128xf32>
    %19 = arith.mulf %9, %18 : vector<16x128xf32>
    %c0_6 = arith.constant 0 : index
    %c0_7 = arith.constant 0 : index
    %20 = vector.load %arg6[%c0_6, %c0_7] : memref<1x128xf32, #tpu.memory_space<vmem>>, vector<1x128xf32>
    %21 = vector.broadcast %20 : vector<1x128xf32> to vector<16x128xf32>
    %22 = arith.mulf %19, %21 : vector<16x128xf32>
    %c0_8 = arith.constant 0 : index
    %c0_9 = arith.constant 0 : index
    %23 = vector.load %arg7[%c0_8, %c0_9] : memref<1x128xf32, #tpu.memory_space<vmem>>, vector<1x128xf32>
    %24 = vector.broadcast %23 : vector<1x128xf32> to vector<16x128xf32>
    %25 = arith.addf %22, %24 : vector<16x128xf32>
    %26 = arith.truncf %25 : vector<16x128xf32> to vector<16x128xbf16>
    %c0_10 = arith.constant 0 : index
    %c0_11 = arith.constant 0 : index
    %27 = vector.load %arg9[%c0_10, %c0_11] : memref<16x768xf32, #tpu.memory_space<vmem>>, vector<16x768xf32>
    %c0_12 = arith.constant 0 : index
    %c0_13 = arith.constant 0 : index
    %28 = vector.load %arg4[%c0_12, %c0_13] : memref<128x768xbf16, #tpu.memory_space<vmem>>, vector<128x768xbf16>
    %cst_14 = arith.constant dense<0.000000e+00> : vector<16x768xf32>
    %29 = tpu.matmul %26, %28, %cst_14 {dimension_numbers = #tpu.dot_dimension_numbers<[1], [0], [0], [1], [0, 0, 1, 1], [], []>} : vector<16x128xbf16>, vector<128x768xbf16>, vector<16x768xf32> -> vector<16x768xf32>
    %30 = arith.addf %27, %29 : vector<16x768xf32>
    %c0_15 = arith.constant 0 : index
    %c0_16 = arith.constant 0 : index
    %31 = vector.load %arg9[%c0_15, %c0_16] : memref<16x768xf32, #tpu.memory_space<vmem>>, vector<16x768xf32>
    tpu.vector_store %arg9[%c0_15, %c0_16], %30 {strides = array<i32>} : memref<16x768xf32, #tpu.memory_space<vmem>>, vector<16x768xf32>,
    %c0_i32_17 = arith.constant 0 : i32
    %32 = arith.cmpi eq, %arg2, %c0_i32_17 : i32
    %33 = arith.extui %32 : i1 to i32
    %c0_i32_18 = arith.constant 0 : i32
    %34 = arith.cmpi ne, %33, %c0_i32_18 : i32
    scf.if %34 {
      %c0_19 = arith.constant 0 : index
      %c0_20 = arith.constant 0 : index
      %35 = vector.load %arg9[%c0_19, %c0_20] : memref<16x768xf32, #tpu.memory_space<vmem>>, vector<16x768xf32>
      %c0_21 = arith.constant 0 : index
      %c0_22 = arith.constant 0 : index
      %36 = vector.load %arg5[%c0_21, %c0_22] : memref<1x768xf32, #tpu.memory_space<vmem>>, vector<1x768xf32>
      %37 = vector.broadcast %36 : vector<1x768xf32> to vector<16x768xf32>
      %38 = arith.addf %35, %37 : vector<16x768xf32>
      %39 = arith.truncf %38 : vector<16x768xf32> to vector<16x768xbf16>
      %c0_23 = arith.constant 0 : index
      %c0_24 = arith.constant 0 : index
      %40 = vector.load %arg8[%c0_23, %c0_24] : memref<16x768xbf16, #tpu.memory_space<vmem>>, vector<16x768xbf16>
      tpu.vector_store %arg8[%c0_23, %c0_24], %39 {strides = array<i32>} : memref<16x768xbf16, #tpu.memory_space<vmem>>, vector<16x768xbf16>,
    } else {
    }
    return
  }
  func.func @transform_0(%arg0: i32, %arg1: i32, %arg2: i32) -> (i32, i32) {
    %c0_i32 = arith.constant 0 : i32
    return %arg0, %arg2 : i32, i32
  }
  func.func @transform_1(%arg0: i32, %arg1: i32, %arg2: i32) -> (i32, i32) {
    %c0_i32 = arith.constant 0 : i32
    return %arg2, %arg1 : i32, i32
  }
  func.func @transform_2(%arg0: i32, %arg1: i32, %arg2: i32) -> (i32, i32) {
    %c0_i32 = arith.constant 0 : i32
    %c0_i32_0 = arith.constant 0 : i32
    return %c0_i32, %arg1 : i32, i32
  }
  func.func @transform_3(%arg0: i32, %arg1: i32, %arg2: i32) -> (i32, i32) {
    %c0_i32 = arith.constant 0 : i32
    %c0_i32_0 = arith.constant 0 : i32
    %c0_i32_1 = arith.constant 0 : i32
    return %c0_i32, %c0_i32_0 : i32, i32
  }
  func.func @transform_4(%arg0: i32, %arg1: i32, %arg2: i32) -> (i32, i32) {
    %c0_i32 = arith.constant 0 : i32
    %c0_i32_0 = arith.constant 0 : i32
    %c0_i32_1 = arith.constant 0 : i32
    return %c0_i32, %c0_i32_0 : i32, i32
  }
  func.func @transform_5(%arg0: i32, %arg1: i32, %arg2: i32) -> (i32, i32) {
    %c0_i32 = arith.constant 0 : i32
    return %arg0, %arg1 : i32, i32
  }
}

module attributes {stable_mosaic.version = 11 : i64} {
  func.func @_linear_kernel(%arg0: i32, %arg1: i32, %arg2: i32, %arg3: memref<16x512xbf16, #tpu.memory_space<vmem>>, %arg4: memref<512x128xbf16, #tpu.memory_space<vmem>>, %arg5: memref<1x128xf32, #tpu.memory_space<vmem>>, %arg6: memref<16x128xf32, #tpu.memory_space<vmem>>, %arg7: memref<16x128xf32, #tpu.memory_space<vmem>>, %arg8: memref<16x128xf32, #tpu.memory_space<vmem>>) attributes {dimension_semantics = [#tpu.dimension_semantics<parallel>, #tpu.dimension_semantics<parallel>, #tpu.dimension_semantics<arbitrary>], iteration_bounds = array<i64: 1, 1, 1>, scalar_prefetch = 0 : i64, scratch_operands = 1 : i64, tpu.core_type = #tpu.core_type<tc>, window_params = [{transform_indices = @transform_0, window_bounds = array<i64: 16, 512>}, {transform_indices = @transform_1, window_bounds = array<i64: 512, 128>}, {transform_indices = @transform_2, window_bounds = array<i64: 1, 128>}, {transform_indices = @transform_3, window_bounds = array<i64: 16, 128>}, {transform_indices = @transform_4, window_bounds = array<i64: 16, 128>}]} {
    %c0_i32 = arith.constant 0 : i32
    %0 = arith.cmpi eq, %arg2, %c0_i32 : i32
    %1 = arith.extui %0 : i1 to i32
    %c0_i32_0 = arith.constant 0 : i32
    %2 = arith.cmpi ne, %1, %c0_i32_0 : i32
    scf.if %2 {
      %cst_10 = arith.constant 0.000000e+00 : f32
      %12 = vector.broadcast %cst_10 : f32 to vector<16x128xf32>
      %c0_11 = arith.constant 0 : index
      %c0_12 = arith.constant 0 : index
      %13 = vector.load %arg8[%c0_11, %c0_12] : memref<16x128xf32, #tpu.memory_space<vmem>>, vector<16x128xf32>
      tpu.vector_store %arg8[%c0_11, %c0_12], %12 {strides = array<i32>} : memref<16x128xf32, #tpu.memory_space<vmem>>, vector<16x128xf32>,
    } else {
    }
    %c0 = arith.constant 0 : index
    %c0_1 = arith.constant 0 : index
    %3 = vector.load %arg3[%c0, %c0_1] : memref<16x512xbf16, #tpu.memory_space<vmem>>, vector<16x512xbf16>
    %c0_2 = arith.constant 0 : index
    %c0_3 = arith.constant 0 : index
    %4 = vector.load %arg8[%c0_2, %c0_3] : memref<16x128xf32, #tpu.memory_space<vmem>>, vector<16x128xf32>
    %c0_4 = arith.constant 0 : index
    %c0_5 = arith.constant 0 : index
    %5 = vector.load %arg4[%c0_4, %c0_5] : memref<512x128xbf16, #tpu.memory_space<vmem>>, vector<512x128xbf16>
    %cst = arith.constant dense<0.000000e+00> : vector<16x128xf32>
    %6 = tpu.matmul %3, %5, %cst {dimension_numbers = #tpu.dot_dimension_numbers<[1], [0], [0], [1], [0, 0, 1, 1], [], []>} : vector<16x512xbf16>, vector<512x128xbf16>, vector<16x128xf32> -> vector<16x128xf32>
    %7 = arith.addf %4, %6 : vector<16x128xf32>
    %c0_6 = arith.constant 0 : index
    %c0_7 = arith.constant 0 : index
    %8 = vector.load %arg8[%c0_6, %c0_7] : memref<16x128xf32, #tpu.memory_space<vmem>>, vector<16x128xf32>
    tpu.vector_store %arg8[%c0_6, %c0_7], %7 {strides = array<i32>} : memref<16x128xf32, #tpu.memory_space<vmem>>, vector<16x128xf32>,
    %c0_i32_8 = arith.constant 0 : i32
    %9 = arith.cmpi eq, %arg2, %c0_i32_8 : i32
    %10 = arith.extui %9 : i1 to i32
    %c0_i32_9 = arith.constant 0 : i32
    %11 = arith.cmpi ne, %10, %c0_i32_9 : i32
    scf.if %11 {
      %c0_10 = arith.constant 0 : index
      %c0_11 = arith.constant 0 : index
      %12 = vector.load %arg8[%c0_10, %c0_11] : memref<16x128xf32, #tpu.memory_space<vmem>>, vector<16x128xf32>
      %c0_12 = arith.constant 0 : index
      %c0_13 = arith.constant 0 : index
      %13 = vector.load %arg5[%c0_12, %c0_13] : memref<1x128xf32, #tpu.memory_space<vmem>>, vector<1x128xf32>
      %14 = vector.broadcast %13 : vector<1x128xf32> to vector<16x128xf32>
      %15 = arith.addf %12, %14 : vector<16x128xf32>
      %c0_14 = arith.constant 0 : index
      %c0_15 = arith.constant 0 : index
      %16 = vector.load %arg6[%c0_14, %c0_15] : memref<16x128xf32, #tpu.memory_space<vmem>>, vector<16x128xf32>
      %17 = arith.addf %15, %16 : vector<16x128xf32>
      %c0_16 = arith.constant 0 : index
      %c0_17 = arith.constant 0 : index
      %18 = vector.load %arg7[%c0_16, %c0_17] : memref<16x128xf32, #tpu.memory_space<vmem>>, vector<16x128xf32>
      tpu.vector_store %arg7[%c0_16, %c0_17], %17 {strides = array<i32>} : memref<16x128xf32, #tpu.memory_space<vmem>>, vector<16x128xf32>,
    } else {
    }
    return
  }
  func.func @transform_0(%arg0: i32, %arg1: i32, %arg2: i32) -> (i32, i32) {
    %c0_i32 = arith.constant 0 : i32
    return %arg0, %arg2 : i32, i32
  }
  func.func @transform_1(%arg0: i32, %arg1: i32, %arg2: i32) -> (i32, i32) {
    %c0_i32 = arith.constant 0 : i32
    return %arg2, %arg1 : i32, i32
  }
  func.func @transform_2(%arg0: i32, %arg1: i32, %arg2: i32) -> (i32, i32) {
    %c0_i32 = arith.constant 0 : i32
    %c0_i32_0 = arith.constant 0 : i32
    return %c0_i32, %arg1 : i32, i32
  }
  func.func @transform_3(%arg0: i32, %arg1: i32, %arg2: i32) -> (i32, i32) {
    %c0_i32 = arith.constant 0 : i32
    return %arg0, %arg1 : i32, i32
  }
  func.func @transform_4(%arg0: i32, %arg1: i32, %arg2: i32) -> (i32, i32) {
    %c0_i32 = arith.constant 0 : i32
    return %arg0, %arg1 : i32, i32
  }
}

module attributes {stable_mosaic.version = 11 : i64} {
  func.func @_linear_kernel(%arg0: i32, %arg1: i32, %arg2: i32, %arg3: memref<16x256xbf16, #tpu.memory_space<vmem>>, %arg4: memref<256x128xbf16, #tpu.memory_space<vmem>>, %arg5: memref<1x128xf32, #tpu.memory_space<vmem>>, %arg6: memref<16x128xf32, #tpu.memory_space<vmem>>, %arg7: memref<16x128xf32, #tpu.memory_space<vmem>>, %arg8: memref<16x128xf32, #tpu.memory_space<vmem>>) attributes {dimension_semantics = [#tpu.dimension_semantics<parallel>, #tpu.dimension_semantics<parallel>, #tpu.dimension_semantics<arbitrary>], iteration_bounds = array<i64: 1, 1, 1>, scalar_prefetch = 0 : i64, scratch_operands = 1 : i64, tpu.core_type = #tpu.core_type<tc>, window_params = [{transform_indices = @transform_0, window_bounds = array<i64: 16, 256>}, {transform_indices = @transform_1, window_bounds = array<i64: 256, 128>}, {transform_indices = @transform_2, window_bounds = array<i64: 1, 128>}, {transform_indices = @transform_3, window_bounds = array<i64: 16, 128>}, {transform_indices = @transform_4, window_bounds = array<i64: 16, 128>}]} {
    %c0_i32 = arith.constant 0 : i32
    %0 = arith.cmpi eq, %arg2, %c0_i32 : i32
    %1 = arith.extui %0 : i1 to i32
    %c0_i32_0 = arith.constant 0 : i32
    %2 = arith.cmpi ne, %1, %c0_i32_0 : i32
    scf.if %2 {
      %cst_10 = arith.constant 0.000000e+00 : f32
      %12 = vector.broadcast %cst_10 : f32 to vector<16x128xf32>
      %c0_11 = arith.constant 0 : index
      %c0_12 = arith.constant 0 : index
      %13 = vector.load %arg8[%c0_11, %c0_12] : memref<16x128xf32, #tpu.memory_space<vmem>>, vector<16x128xf32>
      tpu.vector_store %arg8[%c0_11, %c0_12], %12 {strides = array<i32>} : memref<16x128xf32, #tpu.memory_space<vmem>>, vector<16x128xf32>,
    } else {
    }
    %c0 = arith.constant 0 : index
    %c0_1 = arith.constant 0 : index
    %3 = vector.load %arg3[%c0, %c0_1] : memref<16x256xbf16, #tpu.memory_space<vmem>>, vector<16x256xbf16>
    %c0_2 = arith.constant 0 : index
    %c0_3 = arith.constant 0 : index
    %4 = vector.load %arg8[%c0_2, %c0_3] : memref<16x128xf32, #tpu.memory_space<vmem>>, vector<16x128xf32>
    %c0_4 = arith.constant 0 : index
    %c0_5 = arith.constant 0 : index
    %5 = vector.load %arg4[%c0_4, %c0_5] : memref<256x128xbf16, #tpu.memory_space<vmem>>, vector<256x128xbf16>
    %cst = arith.constant dense<0.000000e+00> : vector<16x128xf32>
    %6 = tpu.matmul %3, %5, %cst {dimension_numbers = #tpu.dot_dimension_numbers<[1], [0], [0], [1], [0, 0, 1, 1], [], []>} : vector<16x256xbf16>, vector<256x128xbf16>, vector<16x128xf32> -> vector<16x128xf32>
    %7 = arith.addf %4, %6 : vector<16x128xf32>
    %c0_6 = arith.constant 0 : index
    %c0_7 = arith.constant 0 : index
    %8 = vector.load %arg8[%c0_6, %c0_7] : memref<16x128xf32, #tpu.memory_space<vmem>>, vector<16x128xf32>
    tpu.vector_store %arg8[%c0_6, %c0_7], %7 {strides = array<i32>} : memref<16x128xf32, #tpu.memory_space<vmem>>, vector<16x128xf32>,
    %c0_i32_8 = arith.constant 0 : i32
    %9 = arith.cmpi eq, %arg2, %c0_i32_8 : i32
    %10 = arith.extui %9 : i1 to i32
    %c0_i32_9 = arith.constant 0 : i32
    %11 = arith.cmpi ne, %10, %c0_i32_9 : i32
    scf.if %11 {
      %c0_10 = arith.constant 0 : index
      %c0_11 = arith.constant 0 : index
      %12 = vector.load %arg8[%c0_10, %c0_11] : memref<16x128xf32, #tpu.memory_space<vmem>>, vector<16x128xf32>
      %c0_12 = arith.constant 0 : index
      %c0_13 = arith.constant 0 : index
      %13 = vector.load %arg5[%c0_12, %c0_13] : memref<1x128xf32, #tpu.memory_space<vmem>>, vector<1x128xf32>
      %14 = vector.broadcast %13 : vector<1x128xf32> to vector<16x128xf32>
      %15 = arith.addf %12, %14 : vector<16x128xf32>
      %c0_14 = arith.constant 0 : index
      %c0_15 = arith.constant 0 : index
      %16 = vector.load %arg6[%c0_14, %c0_15] : memref<16x128xf32, #tpu.memory_space<vmem>>, vector<16x128xf32>
      %17 = arith.addf %15, %16 : vector<16x128xf32>
      %c0_16 = arith.constant 0 : index
      %c0_17 = arith.constant 0 : index
      %18 = vector.load %arg7[%c0_16, %c0_17] : memref<16x128xf32, #tpu.memory_space<vmem>>, vector<16x128xf32>
      tpu.vector_store %arg7[%c0_16, %c0_17], %17 {strides = array<i32>} : memref<16x128xf32, #tpu.memory_space<vmem>>, vector<16x128xf32>,
    } else {
    }
    return
  }
  func.func @transform_0(%arg0: i32, %arg1: i32, %arg2: i32) -> (i32, i32) {
    %c0_i32 = arith.constant 0 : i32
    return %arg0, %arg2 : i32, i32
  }
  func.func @transform_1(%arg0: i32, %arg1: i32, %arg2: i32) -> (i32, i32) {
    %c0_i32 = arith.constant 0 : i32
    return %arg2, %arg1 : i32, i32
  }
  func.func @transform_2(%arg0: i32, %arg1: i32, %arg2: i32) -> (i32, i32) {
    %c0_i32 = arith.constant 0 : i32
    %c0_i32_0 = arith.constant 0 : i32
    return %c0_i32, %arg1 : i32, i32
  }
  func.func @transform_3(%arg0: i32, %arg1: i32, %arg2: i32) -> (i32, i32) {
    %c0_i32 = arith.constant 0 : i32
    return %arg0, %arg1 : i32, i32
  }
  func.func @transform_4(%arg0: i32, %arg1: i32, %arg2: i32) -> (i32, i32) {
    %c0_i32 = arith.constant 0 : i32
    return %arg0, %arg1 : i32, i32
  }
}

module attributes {stable_mosaic.version = 11 : i64} {
  func.func @_linear_kernel(%arg0: i32, %arg1: i32, %arg2: i32, %arg3: memref<16x128xf32, #tpu.memory_space<vmem>>, %arg4: memref<128x256xbf16, #tpu.memory_space<vmem>>, %arg5: memref<1x256xf32, #tpu.memory_space<vmem>>, %arg6: memref<1x128xf32, #tpu.memory_space<vmem>>, %arg7: memref<1x128xf32, #tpu.memory_space<vmem>>, %arg8: memref<16x256xbf16, #tpu.memory_space<vmem>>, %arg9: memref<16x256xf32, #tpu.memory_space<vmem>>) attributes {dimension_semantics = [#tpu.dimension_semantics<parallel>, #tpu.dimension_semantics<parallel>, #tpu.dimension_semantics<arbitrary>], iteration_bounds = array<i64: 1, 1, 1>, scalar_prefetch = 0 : i64, scratch_operands = 1 : i64, tpu.core_type = #tpu.core_type<tc>, window_params = [{transform_indices = @transform_0, window_bounds = array<i64: 16, 128>}, {transform_indices = @transform_1, window_bounds = array<i64: 128, 256>}, {transform_indices = @transform_2, window_bounds = array<i64: 1, 256>}, {pipeline_mode = #tpu.pipeline_mode<synchronous>, transform_indices = @transform_3, window_bounds = array<i64: 1, 128>}, {pipeline_mode = #tpu.pipeline_mode<synchronous>, transform_indices = @transform_4, window_bounds = array<i64: 1, 128>}, {transform_indices = @transform_5, window_bounds = array<i64: 16, 256>}]} {
    %c0_i32 = arith.constant 0 : i32
    %0 = arith.cmpi eq, %arg2, %c0_i32 : i32
    %1 = arith.extui %0 : i1 to i32
    %c0_i32_0 = arith.constant 0 : i32
    %2 = arith.cmpi ne, %1, %c0_i32_0 : i32
    scf.if %2 {
      %cst_19 = arith.constant 0.000000e+00 : f32
      %35 = vector.broadcast %cst_19 : f32 to vector<16x256xf32>
      %c0_20 = arith.constant 0 : index
      %c0_21 = arith.constant 0 : index
      %36 = vector.load %arg9[%c0_20, %c0_21] : memref<16x256xf32, #tpu.memory_space<vmem>>, vector<16x256xf32>
      tpu.vector_store %arg9[%c0_20, %c0_21], %35 {strides = array<i32>} : memref<16x256xf32, #tpu.memory_space<vmem>>, vector<16x256xf32>,
    } else {
    }
    %c0 = arith.constant 0 : index
    %c0_1 = arith.constant 0 : index
    %3 = vector.load %arg3[%c0, %c0_1] : memref<16x128xf32, #tpu.memory_space<vmem>>, vector<16x128xf32>
    %cst = arith.constant dense<0.000000e+00> : vector<16xf32>
    %4 = vector.multi_reduction <add>, %3, %cst [1] : vector<16x128xf32> to vector<16xf32>
    %5 = vector.shape_cast %4 : vector<16xf32> to vector<16x1xf32>
    %cst_2 = arith.constant 1.280000e+02 : f32
    %6 = vector.broadcast %cst_2 : f32 to vector<16x1xf32>
    %7 = arith.divf %5, %6 : vector<16x1xf32>
    %8 = vector.broadcast %7 : vector<16x1xf32> to vector<16x128xf32>
    %9 = arith.subf %3, %8 : vector<16x128xf32>
    %10 = arith.mulf %9, %9 : vector<16x128xf32>
    %cst_3 = arith.constant dense<0.000000e+00> : vector<16xf32>
    %11 = vector.multi_reduction <add>, %10, %cst_3 [1] : vector<16x128xf32> to vector<16xf32>
    %12 = vector.shape_cast %11 : vector<16xf32> to vector<16x1xf32>
    %cst_4 = arith.constant 1.280000e+02 : f32
    %13 = vector.broadcast %cst_4 : f32 to vector<16x1xf32>
    %14 = arith.divf %12, %13 : vector<16x1xf32>
    %cst_5 = arith.constant 9.99999974E-6 : f32
    %15 = vector.broadcast %cst_5 : f32 to vector<16x1xf32>
    %16 = arith.addf %14, %15 : vector<16x1xf32>
    %17 = math.rsqrt %16 : vector<16x1xf32>
    %18 = vector.broadcast %17 : vector<16x1xf32> to vector<16x128xf32>
    %19 = arith.mulf %9, %18 : vector<16x128xf32>
    %c0_6 = arith.constant 0 : index
    %c0_7 = arith.constant 0 : index
    %20 = vector.load %arg6[%c0_6, %c0_7] : memref<1x128xf32, #tpu.memory_space<vmem>>, vector<1x128xf32>
    %21 = vector.broadcast %20 : vector<1x128xf32> to vector<16x128xf32>
    %22 = arith.mulf %19, %21 : vector<16x128xf32>
    %c0_8 = arith.constant 0 : index
    %c0_9 = arith.constant 0 : index
    %23 = vector.load %arg7[%c0_8, %c0_9] : memref<1x128xf32, #tpu.memory_space<vmem>>, vector<1x128xf32>
    %24 = vector.broadcast %23 : vector<1x128xf32> to vector<16x128xf32>
    %25 = arith.addf %22, %24 : vector<16x128xf32>
    %26 = arith.truncf %25 : vector<16x128xf32> to vector<16x128xbf16>
    %c0_10 = arith.constant 0 : index
    %c0_11 = arith.constant 0 : index
    %27 = vector.load %arg9[%c0_10, %c0_11] : memref<16x256xf32, #tpu.memory_space<vmem>>, vector<16x256xf32>
    %c0_12 = arith.constant 0 : index
    %c0_13 = arith.constant 0 : index
    %28 = vector.load %arg4[%c0_12, %c0_13] : memref<128x256xbf16, #tpu.memory_space<vmem>>, vector<128x256xbf16>
    %cst_14 = arith.constant dense<0.000000e+00> : vector<16x256xf32>
    %29 = tpu.matmul %26, %28, %cst_14 {dimension_numbers = #tpu.dot_dimension_numbers<[1], [0], [0], [1], [0, 0, 1, 1], [], []>} : vector<16x128xbf16>, vector<128x256xbf16>, vector<16x256xf32> -> vector<16x256xf32>
    %30 = arith.addf %27, %29 : vector<16x256xf32>
    %c0_15 = arith.constant 0 : index
    %c0_16 = arith.constant 0 : index
    %31 = vector.load %arg9[%c0_15, %c0_16] : memref<16x256xf32, #tpu.memory_space<vmem>>, vector<16x256xf32>
    tpu.vector_store %arg9[%c0_15, %c0_16], %30 {strides = array<i32>} : memref<16x256xf32, #tpu.memory_space<vmem>>, vector<16x256xf32>,
    %c0_i32_17 = arith.constant 0 : i32
    %32 = arith.cmpi eq, %arg2, %c0_i32_17 : i32
    %33 = arith.extui %32 : i1 to i32
    %c0_i32_18 = arith.constant 0 : i32
    %34 = arith.cmpi ne, %33, %c0_i32_18 : i32
    scf.if %34 {
      %c0_19 = arith.constant 0 : index
      %c0_20 = arith.constant 0 : index
      %35 = vector.load %arg9[%c0_19, %c0_20] : memref<16x256xf32, #tpu.memory_space<vmem>>, vector<16x256xf32>
      %c0_21 = arith.constant 0 : index
      %c0_22 = arith.constant 0 : index
      %36 = vector.load %arg5[%c0_21, %c0_22] : memref<1x256xf32, #tpu.memory_space<vmem>>, vector<1x256xf32>
      %37 = vector.broadcast %36 : vector<1x256xf32> to vector<16x256xf32>
      %38 = arith.addf %35, %37 : vector<16x256xf32>
      %cst_23 = arith.constant 5.000000e-01 : f32
      %39 = vector.broadcast %cst_23 : f32 to vector<16x256xf32>
      %40 = arith.mulf %39, %38 : vector<16x256xf32>
      %cst_24 = arith.constant 4.471500e-02 : f32
      %41 = vector.broadcast %cst_24 : f32 to vector<16x256xf32>
      %42 = arith.mulf %41, %38 : vector<16x256xf32>
      %43 = arith.mulf %42, %38 : vector<16x256xf32>
      %44 = arith.mulf %43, %38 : vector<16x256xf32>
      %45 = arith.addf %38, %44 : vector<16x256xf32>
      %cst_25 = arith.constant 0.797884583 : f32
      %46 = vector.broadcast %cst_25 : f32 to vector<16x256xf32>
      %47 = arith.mulf %46, %45 : vector<16x256xf32>
      %48 = math.tanh %47 : vector<16x256xf32>
      %cst_26 = arith.constant 1.000000e+00 : f32
      %49 = vector.broadcast %cst_26 : f32 to vector<16x256xf32>
      %50 = arith.addf %49, %48 : vector<16x256xf32>
      %51 = arith.mulf %40, %50 : vector<16x256xf32>
      %52 = arith.truncf %51 : vector<16x256xf32> to vector<16x256xbf16>
      %c0_27 = arith.constant 0 : index
      %c0_28 = arith.constant 0 : index
      %53 = vector.load %arg8[%c0_27, %c0_28] : memref<16x256xbf16, #tpu.memory_space<vmem>>, vector<16x256xbf16>
      tpu.vector_store %arg8[%c0_27, %c0_28], %52 {strides = array<i32>} : memref<16x256xbf16, #tpu.memory_space<vmem>>, vector<16x256xbf16>,
    } else {
    }
    return
  }
  func.func @transform_0(%arg0: i32, %arg1: i32, %arg2: i32) -> (i32, i32) {
    %c0_i32 = arith.constant 0 : i32
    return %arg0, %arg2 : i32, i32
  }
  func.func @transform_1(%arg0: i32, %arg1: i32, %arg2: i32) -> (i32, i32) {
    %c0_i32 = arith.constant 0 : i32
    return %arg2, %arg1 : i32, i32
  }
  func.func @transform_2(%arg0: i32, %arg1: i32, %arg2: i32) -> (i32, i32) {
    %c0_i32 = arith.constant 0 : i32
    %c0_i32_0 = arith.constant 0 : i32
    return %c0_i32, %arg1 : i32, i32
  }
  func.func @transform_3(%arg0: i32, %arg1: i32, %arg2: i32) -> (i32, i32) {
    %c0_i32 = arith.constant 0 : i32
    %c0_i32_0 = arith.constant 0 : i32
    %c0_i32_1 = arith.constant 0 : i32
    return %c0_i32, %c0_i32_0 : i32, i32
  }
  func.func @transform_4(%arg0: i32, %arg1: i32, %arg2: i32) -> (i32, i32) {
    %c0_i32 = arith.constant 0 : i32
    %c0_i32_0 = arith.constant 0 : i32
    %c0_i32_1 = arith.constant 0 : i32
    return %c0_i32, %c0_i32_0 : i32, i32
  }
  func.func @transform_5(%arg0: i32, %arg1: i32, %arg2: i32) -> (i32, i32) {
    %c0_i32 = arith.constant 0 : i32
    return %arg0, %arg1 : i32, i32
  }
}

module attributes {stable_mosaic.version = 11 : i64} {
  func.func @_layernorm_kernel(%arg0: i32, %arg1: memref<16x128xf32, #tpu.memory_space<vmem>>, %arg2: memref<1x128xf32, #tpu.memory_space<vmem>>, %arg3: memref<1x128xf32, #tpu.memory_space<vmem>>, %arg4: memref<16x128xf32, #tpu.memory_space<vmem>>) attributes {dimension_semantics = [#tpu.dimension_semantics<parallel>], iteration_bounds = array<i64: 1>, scalar_prefetch = 0 : i64, scratch_operands = 0 : i64, tpu.core_type = #tpu.core_type<tc>, window_params = [{transform_indices = @transform_0, window_bounds = array<i64: 16, 128>}, {pipeline_mode = #tpu.pipeline_mode<synchronous>, transform_indices = @transform_1, window_bounds = array<i64: 1, 128>}, {pipeline_mode = #tpu.pipeline_mode<synchronous>, transform_indices = @transform_2, window_bounds = array<i64: 1, 128>}, {transform_indices = @transform_3, window_bounds = array<i64: 16, 128>}]} {
    %c0 = arith.constant 0 : index
    %c0_0 = arith.constant 0 : index
    %0 = vector.load %arg1[%c0, %c0_0] : memref<16x128xf32, #tpu.memory_space<vmem>>, vector<16x128xf32>
    %cst = arith.constant dense<0.000000e+00> : vector<16xf32>
    %1 = vector.multi_reduction <add>, %0, %cst [1] : vector<16x128xf32> to vector<16xf32>
    %2 = vector.shape_cast %1 : vector<16xf32> to vector<16x1xf32>
    %cst_1 = arith.constant 1.280000e+02 : f32
    %3 = vector.broadcast %cst_1 : f32 to vector<16x1xf32>
    %4 = arith.divf %2, %3 : vector<16x1xf32>
    %5 = vector.broadcast %4 : vector<16x1xf32> to vector<16x128xf32>
    %6 = arith.subf %0, %5 : vector<16x128xf32>
    %7 = arith.mulf %6, %6 : vector<16x128xf32>
    %cst_2 = arith.constant dense<0.000000e+00> : vector<16xf32>
    %8 = vector.multi_reduction <add>, %7, %cst_2 [1] : vector<16x128xf32> to vector<16xf32>
    %9 = vector.shape_cast %8 : vector<16xf32> to vector<16x1xf32>
    %cst_3 = arith.constant 1.280000e+02 : f32
    %10 = vector.broadcast %cst_3 : f32 to vector<16x1xf32>
    %11 = arith.divf %9, %10 : vector<16x1xf32>
    %12 = vector.broadcast %4 : vector<16x1xf32> to vector<16x128xf32>
    %13 = arith.subf %0, %12 : vector<16x128xf32>
    %cst_4 = arith.constant 9.99999974E-6 : f32
    %14 = vector.broadcast %cst_4 : f32 to vector<16x1xf32>
    %15 = arith.addf %11, %14 : vector<16x1xf32>
    %16 = math.rsqrt %15 : vector<16x1xf32>
    %17 = vector.broadcast %16 : vector<16x1xf32> to vector<16x128xf32>
    %18 = arith.mulf %13, %17 : vector<16x128xf32>
    %c0_5 = arith.constant 0 : index
    %c0_6 = arith.constant 0 : index
    %19 = vector.load %arg2[%c0_5, %c0_6] : memref<1x128xf32, #tpu.memory_space<vmem>>, vector<1x128xf32>
    %20 = vector.broadcast %19 : vector<1x128xf32> to vector<16x128xf32>
    %21 = arith.mulf %18, %20 : vector<16x128xf32>
    %c0_7 = arith.constant 0 : index
    %c0_8 = arith.constant 0 : index
    %22 = vector.load %arg3[%c0_7, %c0_8] : memref<1x128xf32, #tpu.memory_space<vmem>>, vector<1x128xf32>
    %23 = vector.broadcast %22 : vector<1x128xf32> to vector<16x128xf32>
    %24 = arith.addf %21, %23 : vector<16x128xf32>
    %c0_9 = arith.constant 0 : index
    %c0_10 = arith.constant 0 : index
    %25 = vector.load %arg4[%c0_9, %c0_10] : memref<16x128xf32, #tpu.memory_space<vmem>>, vector<16x128xf32>
    tpu.vector_store %arg4[%c0_9, %c0_10], %24 {strides = array<i32>} : memref<16x128xf32, #tpu.memory_space<vmem>>, vector<16x128xf32>,
    return
  }
  func.func @transform_0(%arg0: i32) -> (i32, i32) {
    %c0_i32 = arith.constant 0 : i32
    %c0_i32_0 = arith.constant 0 : i32
    return %arg0, %c0_i32 : i32, i32
  }
  func.func @transform_1(%arg0: i32) -> (i32, i32) {
    %c0_i32 = arith.constant 0 : i32
    %c0_i32_0 = arith.constant 0 : i32
    %c0_i32_1 = arith.constant 0 : i32
    return %c0_i32, %c0_i32_0 : i32, i32
  }
  func.func @transform_2(%arg0: i32) -> (i32, i32) {
    %c0_i32 = arith.constant 0 : i32
    %c0_i32_0 = arith.constant 0 : i32
    %c0_i32_1 = arith.constant 0 : i32
    return %c0_i32, %c0_i32_0 : i32, i32
  }
  func.func @transform_3(%arg0: i32) -> (i32, i32) {
    %c0_i32 = arith.constant 0 : i32
    %c0_i32_0 = arith.constant 0 : i32
    return %arg0, %c0_i32 : i32, i32
  }
}

</mosaic_0001>

<bundles_post_ra>
// kernel: vit_forward.14
= control target key start
LH: loop header
LB: loop body
LE: loop exit
PB: predicated region body
PF: predicated region fallthrough
CT: control target
= control target key end

     0   :  { %s475_s6 = smov 0   ;;  %s477_s7 = smov 0   ;;  %s538_s0 = inlined_call_operand.vmem [shape: bf16[2,8,1536], index: 0, kind: input, shape index: {}]   ;;  %s539_s1 = inlined_call_operand.vmem [shape: bf16[2,8,512], index: 1, kind: output, shape index: {}]  }
   0x1   :  { %s479_s8 = smov 0   ;;  %s481_s9 = smov 0  }
   0x2   :  { %s483_s10 = smov 0  }
   0x3 LB: > { %s20_s11 = sadd.s32 1, %s453_s8  ;;  %s23_s12 = sadd.s32 1, %s457_s9  ;;  %s461_s10 = sphi %s483_s10, %s11_s10   ;;  %s457_s9 = sphi %s481_s9, %s543_s9   ;;  %s453_s8 = sphi %s479_s8, %s542_s8   ;;  %s449_s7 = sphi %s477_s7, %s541_s7   ;;  %s445_s6 = sphi %s475_s6, %s540_s6  }
   0x4   : > { %p21_p0 = scmp.ge.s32.totalorder %s20_s11, 4  ;;  %p353_p1 = scmp.ge.s32.totalorder %s461_s10, 1 }
   0x5   : > { %p108_p2 = scmp.lt.s32.totalorder %s461_s10, 9 }
   0x6   : > { %s545_s11 = smov (%p21_p0, %s20_s11), 0  ;;  %s547_s12 = smov (!%p21_p0, %s23_s12), %s457_s9 }
   0x7   : > { %p109_p3 = pnand %p353_p1, %p108_p2  ;;  %p25_p4 = scmp.ge.s32.totalorder %s547_s12, 2 }
   0x8   : > { %s135_s13 = smul.u32 (!%p109_p3), 3, %s445_s6  ;;  %p136_p5 = scmp.lt.s32.totalorder (!%p109_p3), %s449_s7, 1  ;;  %v463_v0 = vmov (!%p109_p3), 0.0   ;;  %vm464_vm0 = vmmov (!%p109_p3), 0   ;;  %v197_v3 = vlaneseq (!%p109_p3)  ;;  %vm201_vm2 = vcmask (!%p109_p3), 64512  }
   0x9   : > { %s549_s12 = smov (%p25_p4, %s547_s12), 0  ;;  %112 = sbr.rel (%p109_p3) target bundleno = 620 (0x26c), region = 24 }
   0xa   : > { %364 = vmatprep.subr.bf16.mxu0 (!%p109_p3), %v463_v0  ;;  %366 = vmatprep.mubr.msk.bf16.mxu0 (!%p109_p3), %vm464_vm0, %v463_v0  ;;  %p138_p6 = scmp.lt.s32.totalorder (!%p109_p3), %s135_s13, 11  ;;  %v198_v4 = vand.u32 (!%p109_p3), 127, %v197_v3  ;;  %vm215_vm3 = vcmask (!%p109_p3), 1043456   ;;  %p147_p7 = scmp.lt.s32.totalorder (!%p109_p3), %s445_s6, 3 }
   0xb   : > { %370 = vmatprep.subr.bf16.mxu1 (!%p109_p3), %v463_v0  ;;  %372 = vmatprep.mubr.msk.bf16.mxu1 (!%p109_p3), %vm464_vm0, %v463_v0 }
   0xc   : > { %vm199_vm1 = vcmp.lt.s32.totalorder (!%p109_p3), %v198_v4, 4 }
  0x10   : > { %s551_s7 = smov (!%p136_p5, %s449_s7), 1  ;;  %s553_s13 = smov (!%p138_p6, %s135_s13), 11 }
  0x11   : > { %s376_s14 = smul.u32 12, %s551_s7  ;;  %s555_s6 = smov (!%p147_p7, %s445_s6), 3 }
  0x12   : > { %s355_s20 = sshll.u32 %s551_s7, 2 }
  0x13   : > { %s141_s15 = sadd.s32 %s376_s14, %s553_s13  ;;  %s150_s21 = sadd.s32 %s355_s20, %s555_s6 }
  0x14   : > { %s354_s16 = sshll.u32 %s141_s15, 2  ;;  %s356_s22 = sshll.u32 %s150_s21, 2 }
  0x15   : > { %s143_s19 = scalar_lea.vmem %s538_s0, %s354_s16  ;;  %s152_s25 = scalar_lea.vmem %s539_s1, %s356_s22 }
  0x16   : > { %v155_v1 = vld [vmem:[%s143_s19 + $0x4] sm:$0xf]  ;;  %v154_v2 = vld [vmem:[%s143_s19] sm:$0xf]  ;;  %v156_v11 = vld [vmem:[%s143_s19 + $0x8] sm:$0xf] }
  0x17   : > { %365 = vmatpush3.bf16.xpose.msra.mxu0 %v155_v1  ;;  %v217_v12 = vsel %vm215_vm3, %v156_v11, 0 }
  0x18   : > { %371 = vmatpush3.bf16.msra.mxu1 %v217_v12 }
  0x1e   : > { %367 = vmatmul.mubr.bf16.vlgmr.msra.gmra.mrb[0].mxu0 %v154_v2 }
  0xf1   : > { %v191_v5 = vpop.f32.mrb[0].mxu0 }
  0xf2   : > { %v200_v6 = vsel %vm199_vm1, %v191_v5, -1e+30  ;;  %v368_v7 = vpop.f32.mrb[1].mxu0 }
  0xf3   : > { %v194_v8 = vpop.f32.mrb[2].mxu0  ;;  %v202_v9 = vsel %vm201_vm2, %v200_v6, -inf }
  0xf4   : > { %203 = vmax.xlane.f32.xlu0 %v202_v9  ;;  %v369_v10 = vpop.f32.mrb[3].mxu0 }
 0x181   : > { %v204_v13 = vpop.xlane.xlu0 %203 }
 0x182   : > { %v205_v14 = vsub.f32 %v200_v6, %v204_v13 }
 0x184   : > { %v206_v15 = vmul.f32 1.442695, %v205_v14 }
 0x186   : > { %419 = vpow2.f32 %v206_v15 }
 0x190   : > { %v420_v16 = vpop.eup %419 }
 0x191   : > { %v208_v17 = vsel %vm201_vm2, %v420_v16, 0.0  ;;  %v211_v18 = vpack.c.bf16 %v420_v16, %v420_v16 }
 0x192   : > { %209 = vadd.xlane.f32.xlu0 %v208_v17 }
 0x193   : > { %373 = vmatmul.mubr.msk.bf16.vlgmr.msra.gmra.mrb[0].mxu1 %vm201_vm2, %v211_v18 }
 0x21f   : > { %v210_v19 = vpop.xlane.xlu0 %209 }
 0x220   : > { %421 = vrcp.f32 %v210_v19 }
 0x22a   : > { %v422_v20 = vpop.eup %421 }
 0x266   : > { %v253_v21 = vpop.f32.mrb[0].mxu1 }
 0x267   : > { %v260_v22 = vmul.f32 %v422_v20, %v253_v21  ;;  %v374_v23 = vpop.f32.mrb[1].mxu1 }
 0x268   : > { %v256_v24 = vpop.f32.mrb[2].mxu1 }
 0x269   : > { %v261_v25 = vpack.c.bf16 %v260_v22, %v260_v22  ;;  %v375_v26 = vpop.f32.mrb[3].mxu1 }
 0x26b   : > { %262 = vst [vmem:[%s152_s25] sm:$0xf] %v261_v25 }
 0x26c PF: > { %s11_s10 = sadd.s32 1, %s461_s10   ;;  %s540_s6 = smov %s453_s8 }
 0x26d   : > { %p8_p8 = scmp.ge.s32.totalorder %s11_s10, 10   ;;  %s541_s7 = smov %s457_s9 }
 0x26e   : > { %s542_s8 = smov %s545_s11  ;;  %s543_s9 = smov %s549_s12 }
 0x26f   :  { %10 = sbr.rel (!%p8_p8) target bundleno = 3 (0x3), region = 54 }

// kernel: vit_forward.12
= control target key start
LH: loop header
LB: loop body
LE: loop exit
PB: predicated region body
PF: predicated region fallthrough
CT: control target
= control target key end

     0   :  { %v697_v34 = vmov 0.0   ;;  %vm698_vm0 = vmmov 0   ;;  %s874_s1 = inlined_call_operand.vmem [shape: bf16[640,128], index: 1, kind: input, shape index: {}]   ;;  %s875_s0 = inlined_call_operand.vmem [shape: bf16[16,640], index: 0, kind: input, shape index: {}]   ;;  %s876_s2 = inlined_call_operand.vmem [shape: f32[1,128], index: 2, kind: input, shape index: {}]   ;;  %s877_s3 = inlined_call_operand.vmem [shape: f32[16,128], index: 3, kind: input, shape index: {}]   ;;  %s878_s4 = inlined_call_operand.vmem [shape: f32[16,128], index: 4, kind: output, shape index: {}]  }
   0x1   :  { %v650_v0 = vld [vmem:[%s874_s1 + $0x40] sm:$0xff]   ;;  %v654_v4 = vld [vmem:[%s874_s1 + $0x48] sm:$0xff]   ;;  %v658_v8 = vld [vmem:[%s874_s1 + $0x50] sm:$0xff]  }
   0x2   :  { %v651_v1 = vld [vmem:[%s874_s1 + $0xc0] sm:$0xff]   ;;  %575 = vmatprep.subr.bf16.mxu0 %v650_v0  ;;  %v655_v5 = vld [vmem:[%s874_s1 + $0xc8] sm:$0xff]   ;;  %v659_v9 = vld [vmem:[%s874_s1 + $0xd0] sm:$0xff]  }
   0x3   :  { %v652_v2 = vld [vmem:[%s874_s1] sm:$0xff]   ;;  %597 = vmatprep.subr.bf16.mxu1 %v651_v1  ;;  %v656_v6 = vld [vmem:[%s874_s1 + $0x8] sm:$0xff]   ;;  %v660_v10 = vld [vmem:[%s874_s1 + $0x10] sm:$0xff]  }
   0x4   :  { %v653_v3 = vld [vmem:[%s874_s1 + $0x80] sm:$0xff]   ;;  %576 = vmatpush3.bf16.msra.mxu0 %v652_v2  ;;  %v657_v7 = vld [vmem:[%s874_s1 + $0x88] sm:$0xff]   ;;  %v661_v11 = vld [vmem:[%s874_s1 + $0x90] sm:$0xff]  }
   0x5   :  { %598 = vmatpush3.bf16.msra.mxu1 %v653_v3  ;;  %577 = vmatprep.subr.bf16.mxu0 %v654_v4  ;;  %v662_v12 = vld [vmem:[%s874_s1 + $0x58] sm:$0xff]   ;;  %v666_v16 = vld [vmem:[%s874_s1 + $0x60] sm:$0xff]   ;;  %v670_v20 = vld [vmem:[%s874_s1 + $0x68] sm:$0xff]  }
   0x6   :  { %599 = vmatprep.subr.bf16.mxu1 %v655_v5  ;;  %v663_v13 = vld [vmem:[%s874_s1 + $0xd8] sm:$0xff]   ;;  %v667_v17 = vld [vmem:[%s874_s1 + $0xe0] sm:$0xff]   ;;  %v671_v21 = vld [vmem:[%s874_s1 + $0xe8] sm:$0xff]  }
   0x7   :  { %v664_v14 = vld [vmem:[%s874_s1 + $0x18] sm:$0xff]   ;;  %v668_v18 = vld [vmem:[%s874_s1 + $0x20] sm:$0xff]   ;;  %v672_v22 = vld [vmem:[%s874_s1 + $0x28] sm:$0xff]  }
   0x8   :  { %578 = vmatpush3.bf16.msra.mxu0 %v656_v6  ;;  %v665_v15 = vld [vmem:[%s874_s1 + $0x98] sm:$0xff]   ;;  %v669_v19 = vld [vmem:[%s874_s1 + $0xa0] sm:$0xff]   ;;  %v673_v23 = vld [vmem:[%s874_s1 + $0xa8] sm:$0xff]  }
   0x9   :  { %600 = vmatpush3.bf16.msra.mxu1 %v657_v7  ;;  %579 = vmatprep.subr.bf16.mxu0 %v658_v8  ;;  %v674_v24 = vld [vmem:[%s874_s1 + $0x70] sm:$0xff]   ;;  %v678_v28 = vld [vmem:[%s874_s1 + $0x78] sm:$0xff]   ;;  %v687_v36 = vld [vmem:[%s875_s0 + $0xc] ss:$20 sps:$4 sm:$0xff]  }
   0xa   :  { %601 = vmatprep.subr.bf16.mxu1 %v659_v9  ;;  %v675_v25 = vld [vmem:[%s874_s1 + $0xf0] sm:$0xff]   ;;  %v679_v29 = vld [vmem:[%s874_s1 + $0xf8] sm:$0xff]   ;;  %v688_v37 = vld [vmem:[%s874_s1 + $0x100] sm:$0xff]   ;;  %451 = vmatprep.mubr.bf16.mxu1 %v687_v36 }
   0xb   :  { %v676_v26 = vld [vmem:[%s874_s1 + $0x30] sm:$0xff]   ;;  %v680_v30 = vld [vmem:[%s874_s1 + $0x38] sm:$0xff]   ;;  %v689_v38 = vld [vmem:[%s874_s1 + $0x108] sm:$0xff]  }
   0xc   :  { %580 = vmatpush3.bf16.msra.mxu0 %v660_v10  ;;  %v677_v27 = vld [vmem:[%s874_s1 + $0xb0] sm:$0xff]   ;;  %v681_v31 = vld [vmem:[%s874_s1 + $0xb8] sm:$0xff]   ;;  %v692_v41 = vld [vmem:[%s874_s1 + $0x120] sm:$0xff]  }
   0xd   :  { %602 = vmatpush3.bf16.msra.mxu1 %v661_v11  ;;  %581 = vmatprep.subr.bf16.mxu0 %v662_v12  ;;  %v682_v32 = vld [vmem:[%s875_s0] ss:$20 sps:$4 sm:$0xff]   ;;  %v684_v33 = vld [vmem:[%s875_s0 + $0x4] ss:$20 sps:$4 sm:$0xff]   ;;  %v685_v35 = vld [vmem:[%s875_s0 + $0x8] ss:$20 sps:$4 sm:$0xff]  }
   0xe   :  { %603 = vmatprep.subr.bf16.mxu1 %v663_v13  ;;  %410 = vmatprep.mubr.bf16.mxu0 %v684_v33  ;;  %v690_v39 = vld [vmem:[%s874_s1 + $0x110] sm:$0xff]   ;;  %v691_v40 = vld [vmem:[%s874_s1 + $0x118] sm:$0xff]   ;;  %v693_v42 = vld [vmem:[%s874_s1 + $0x128] sm:$0xff]  }
   0xf   :  { %v694_v43 = vld [vmem:[%s874_s1 + $0x130] sm:$0xff]   ;;  %v695_v44 = vld [vmem:[%s874_s1 + $0x138] sm:$0xff]   ;;  %v574_v61 = vld [vmem:[%s876_s2] ss:$0 sm:$0xff] }
  0x10   :  { %582 = vmatpush3.bf16.msra.mxu0 %v664_v14  ;;  %v696_v45 = vld [vmem:[%s875_s0 + $0x10] ss:$20 sps:$4 sm:$0xff]   ;;  %v520_v5 = vld [vmem:[%s877_s3 + $0x8] sm:$0xff] }
  0x11   :  { %604 = vmatpush3.bf16.msra.mxu1 %v665_v15  ;;  %583 = vmatprep.subr.bf16.mxu0 %v666_v16  ;;  %v519_v0 = vld [vmem:[%s877_s3] sm:$0xff] }
  0x12   :  { %605 = vmatprep.subr.bf16.mxu1 %v667_v17 }
  0x14   :  { %584 = vmatpush3.bf16.msra.mxu0 %v668_v18 }
  0x15   :  { %606 = vmatpush3.bf16.msra.mxu1 %v669_v19  ;;  %585 = vmatprep.subr.bf16.mxu0 %v670_v20 }
  0x16   :  { %607 = vmatprep.subr.bf16.mxu1 %v671_v21 }
  0x18   :  { %586 = vmatpush3.bf16.msra.mxu0 %v672_v22 }
  0x19   :  { %608 = vmatpush3.bf16.msra.mxu1 %v673_v23  ;;  %587 = vmatprep.subr.bf16.mxu0 %v674_v24 }
  0x1a   :  { %609 = vmatprep.subr.bf16.mxu1 %v675_v25 }
  0x1c   :  { %588 = vmatpush3.bf16.msra.mxu0 %v676_v26 }
  0x1d   :  { %610 = vmatpush3.bf16.msra.mxu1 %v677_v27  ;;  %589 = vmatprep.subr.bf16.mxu0 %v678_v28 }
  0x1e   :  { %611 = vmatprep.subr.bf16.mxu1 %v679_v29 }
  0x20   :  { %590 = vmatpush3.bf16.msra.mxu0 %v680_v30 }
  0x21   :  { %612 = vmatpush3.bf16.msra.mxu1 %v681_v31  ;;  %628 = vmatprep.subr.bf16.mxu0 %v697_v34 }
  0x23   :  { %411 = vmatmul.mubr.bf16.vlgmr.msra.gmra.mrb[0].mxu0 %v682_v32 }
  0x24   :  { %452 = vmatmul.mubr.bf16.vlgmr.msra.gmra.mrb[0].mxu1 %v685_v35  ;;  %629 = vmatpush3.bf16.msra.mxu0 %v688_v37 }
  0x25   :  { %630 = vmatprep.subr.bf16.mxu0 %v697_v34  ;;  %644 = vmatprep.mubr.msk.bf16.mxu0 %vm698_vm0, %v697_v34 }
  0x28   :  { %631 = vmatpush3.bf16.msra.mxu0 %v689_v38 }
  0x29   :  { %632 = vmatprep.subr.bf16.mxu0 %v697_v34 }
  0x2c   :  { %633 = vmatpush3.bf16.msra.mxu0 %v690_v39 }
  0x2d   :  { %634 = vmatprep.subr.bf16.mxu0 %v697_v34 }
  0x30   :  { %635 = vmatpush3.bf16.msra.mxu0 %v691_v40 }
  0x31   :  { %636 = vmatprep.subr.bf16.mxu0 %v697_v34 }
  0x34   :  { %637 = vmatpush3.bf16.msra.mxu0 %v692_v41 }
  0x35   :  { %638 = vmatprep.subr.bf16.mxu0 %v697_v34 }
  0x38   :  { %639 = vmatpush3.bf16.msra.mxu0 %v693_v42 }
  0x39   :  { %640 = vmatprep.subr.bf16.mxu0 %v697_v34 }
  0x3c   :  { %641 = vmatpush3.bf16.msra.mxu0 %v694_v43 }
  0x3d   :  { %642 = vmatprep.subr.bf16.mxu0 %v697_v34 }
  0x40   :  { %643 = vmatpush3.bf16.msra.mxu0 %v695_v44 }
  0x43   :  { %645 = vmatmul.mubr.bf16.vlgmr.msra.gmra.mrb[4].mxu0 %v696_v45 }
  0xf6   :  { %v591_v46 = vpop.f32.mrb[0].mxu0 }
  0xf7   :  { %v613_v47 = vpop.f32.mrb[0].mxu1  ;;  %v592_v48 = vpop.f32.mrb[1].mxu0 }
  0xf8   :  { %v593_v49 = vadd.f32 %v592_v48, %v591_v46  ;;  %v614_v50 = vpop.f32.mrb[1].mxu1  ;;  %v594_v51 = vpop.f32.mrb[2].mxu0 }
  0xf9   :  { %v615_v52 = vadd.f32 %v614_v50, %v613_v47  ;;  %v616_v53 = vpop.f32.mrb[2].mxu1  ;;  %v595_v54 = vpop.f32.mrb[3].mxu0 }
  0xfa   :  { %v596_v55 = vadd.f32 %v595_v54, %v594_v51  ;;  %v617_v56 = vpop.f32.mrb[3].mxu1 }
  0xfb   :  { %v618_v57 = vadd.f32 %v617_v56, %v616_v53  ;;  %v454_v58 = vadd.f32 %v615_v52, %v593_v49 }
  0xfd   :  { %v457_v59 = vadd.f32 %v618_v57, %v596_v55 }
 0x116   :  { %v494_v60 = vpop.f32.mrb[4].mxu0 }
 0x117   :  { %v495_v62 = vadd.f32 %v494_v60, %v454_v58  ;;  %v646_v63 = vpop.f32.mrb[5].mxu0 }
 0x118   :  { %v497_v1 = vpop.f32.mrb[6].mxu0 }
 0x119   :  { %v517_v2 = vadd.f32 %v574_v61, %v495_v62  ;;  %v498_v3 = vadd.f32 %v497_v1, %v457_v59  ;;  %v647_v4 = vpop.f32.mrb[7].mxu0 }
 0x11b   :  { %v521_v6 = vadd.f32 %v519_v0, %v517_v2  ;;  %v518_v7 = vadd.f32 %v574_v61, %v498_v3 }
 0x11d   :  { %523 = vst [vmem:[%s878_s4] sm:$0xff] %v521_v6  ;;  %v522_v8 = vadd.f32 %v520_v5, %v518_v7 }
 0x11f   :  { %524 = vst [vmem:[%s878_s4 + $0x8] sm:$0xff] %v522_v8 }

// kernel: vit_forward.13
= control target key start
LH: loop header
LB: loop body
LE: loop exit
PB: predicated region body
PF: predicated region fallthrough
CT: control target
= control target key end

     0   :  { %s1436_s18 = smov 0   ;;  %s1438_s19 = smov 0   ;;  %s1688_s0 = inlined_call_operand.vmem [shape: f32[16,128], index: 0, kind: input, shape index: {}]   ;;  %s1689_s1 = inlined_call_operand.vmem [shape: bf16[128,1536], index: 1, kind: input, shape index: {}]   ;;  %s1690_s2 = inlined_call_operand.vmem [shape: f32[1,1536], index: 2, kind: input, shape index: {}]   ;;  %s1691_s3 = inlined_call_operand.vmem [shape: f32[1,128], index: 3, kind: input, shape index: {}]   ;;  %s1692_s4 = inlined_call_operand.vmem [shape: f32[1,128], index: 4, kind: input, shape index: {}]   ;;  %s1693_s5 = inlined_call_operand.vmem [shape: bf16[16,1536], index: 5, kind: output, shape index: {}]  }
   0x1   :  { %s1440_s20 = smov 0   ;;  %s1442_s21 = smov 0  }
   0x2   :  { %s1444_s22 = smov 0  }
   0x3 LB: > { %s30_s23 = sadd.s32 1, %s1399_s21  ;;  %s1171_s24 = sadd.s32 4294967295, %s1403_s22   ;;  %s1403_s22 = sphi %s1444_s22, %s15_s22   ;;  %s1399_s21 = sphi %s1442_s21, %s1698_s21   ;;  %s1395_s20 = sphi %s1440_s20, %s1697_s20   ;;  %s1391_s19 = sphi %s1438_s19, %s1696_s19   ;;  %s1387_s18 = sphi %s1436_s18, %s1695_s18  }
   0x4   : > { %p32_p0 = scmp.ge.s32.totalorder %s30_s23, 2  ;;  %p78_p1 = scmp.ne.s32.totalorder %s1391_s19, %s1387_s18 }
   0x5   : > { %p79_p2 = scmp.eq.s32.totalorder %s1403_s22, 0  ;;  %p178_p4 = scmp.eq.s32.totalorder %s1171_s24, 1 }
   0x6   : > { %s1700_s23 = smov (%p32_p0, %s30_s23), 0  ;;  %s71_s26 = sadd.s32 1, %s1391_s19 }
   0x7   : > { %p80_p3 = por %p79_p2, %p78_p1  ;;  %s67_s25 = ssub.s32 %s1399_s21, %s1700_s23 }
   0x8   : > { %p69_p5 = scmp.eq.s32.totalorder %s67_s25, 0  ;;  %p1471_p6 = por %p178_p4, %p78_p1 }
   0x9   : > { %p1175_p7 = scmp.ge.s32.totalorder %s1403_s22, 2 }
   0xa   : > { %s1476_s28 = scalar_select %p69_p5, %s1391_s19, %s71_s26  }
   0xb   : > { %218 = sbr.rel (%p1175_p7) target bundleno = 47 (0x2f), region = 28 }
  0x12   : > { %221 = sbr.rel (!%p80_p3) target bundleno = 47 (0x2f), region = 32  ;;  %s223_s29 = sand.u32 (%p80_p3), 1, %s1391_s19  }
  0x13   : > { %s1237_s30 = smul.u32 (%p80_p3), 24, %s1399_s21 }
  0x14   : > { %s1245_s6 = smul.u32 (%p80_p3), 384, %s223_s29 }
  0x15   : > { %s1484_s9 = scalar_lea.vmem (%p80_p3), %s1689_s1, %s1237_s30 }
  0x16   : > { %v244_v0 = vld [vmem:[%s1484_s9] sm:$0xff] (%p80_p3)  ;;  %v246_v1 = vld [vmem:[%s1484_s9 + $0x8] sm:$0xff] (%p80_p3)  ;;  %v248_v2 = vld [vmem:[%s1484_s9 + $0x10] sm:$0xff] (%p80_p3)  ;;  %s1489_s10 = scalar_lea.vmem (%p80_p3), [#allocation3], %s1245_s6 }
  0x17   : > { %245 = vst [vmem:[%s1489_s10] sm:$0xff] (%p80_p3), %v244_v0  ;;  %247 = vst [vmem:[%s1489_s10 + $0x8] sm:$0xff] (%p80_p3), %v246_v1  ;;  %v250_v3 = vld [vmem:[%s1484_s9 + $0x30] sm:$0xff] (%p80_p3)  ;;  %v252_v4 = vld [vmem:[%s1484_s9 + $0x38] sm:$0xff] (%p80_p3) }
  0x18   : > { %249 = vst [vmem:[%s1489_s10 + $0x10] sm:$0xff] (%p80_p3), %v248_v2  ;;  %v254_v5 = vld [vmem:[%s1484_s9 + $0x40] sm:$0xff] (%p80_p3)  ;;  %251 = vst [vmem:[%s1489_s10 + $0x18] sm:$0xff] (%p80_p3), %v250_v3  ;;  %v258_v7 = vld [vmem:[%s1484_s9 + $0x68] sm:$0xff] (%p80_p3) }
  0x19   : > { %253 = vst [vmem:[%s1489_s10 + $0x20] sm:$0xff] %v252_v4  ;;  %255 = vst [vmem:[%s1489_s10 + $0x28] sm:$0xff] %v254_v5  ;;  %v256_v6 = vld [vmem:[%s1484_s9 + $0x60] sm:$0xff]  ;;  %v260_v8 = vld [vmem:[%s1484_s9 + $0x70] sm:$0xff] }
  0x1a   : > { %257 = vst [vmem:[%s1489_s10 + $0x30] sm:$0xff] %v256_v6  ;;  %259 = vst [vmem:[%s1489_s10 + $0x38] sm:$0xff] %v258_v7  ;;  %v262_v9 = vld [vmem:[%s1484_s9 + $0x90] sm:$0xff]  ;;  %v264_v10 = vld [vmem:[%s1484_s9 + $0x98] sm:$0xff] }
  0x1b   : > { %261 = vst [vmem:[%s1489_s10 + $0x40] sm:$0xff] %v260_v8  ;;  %v266_v11 = vld [vmem:[%s1484_s9 + $0xa0] sm:$0xff]  ;;  %263 = vst [vmem:[%s1489_s10 + $0x48] sm:$0xff] %v262_v9  ;;  %v270_v13 = vld [vmem:[%s1484_s9 + $0xc8] sm:$0xff] }
  0x1c   : > { %265 = vst [vmem:[%s1489_s10 + $0x50] sm:$0xff] %v264_v10  ;;  %267 = vst [vmem:[%s1489_s10 + $0x58] sm:$0xff] %v266_v11  ;;  %v268_v12 = vld [vmem:[%s1484_s9 + $0xc0] sm:$0xff]  ;;  %v272_v14 = vld [vmem:[%s1484_s9 + $0xd0] sm:$0xff] }
  0x1d   : > { %269 = vst [vmem:[%s1489_s10 + $0x60] sm:$0xff] %v268_v12  ;;  %271 = vst [vmem:[%s1489_s10 + $0x68] sm:$0xff] %v270_v13  ;;  %v274_v15 = vld [vmem:[%s1484_s9 + $0xf0] sm:$0xff]  ;;  %v276_v16 = vld [vmem:[%s1484_s9 + $0xf8] sm:$0xff] }
  0x1e   : > { %273 = vst [vmem:[%s1489_s10 + $0x70] sm:$0xff] %v272_v14  ;;  %v278_v17 = vld [vmem:[%s1484_s9 + $0x100] sm:$0xff]  ;;  %275 = vst [vmem:[%s1489_s10 + $0x78] sm:$0xff] %v274_v15  ;;  %v282_v19 = vld [vmem:[%s1484_s9 + $0x128] sm:$0xff] }
  0x1f   : > { %277 = vst [vmem:[%s1489_s10 + $0x80] sm:$0xff] %v276_v16  ;;  %279 = vst [vmem:[%s1489_s10 + $0x88] sm:$0xff] %v278_v17  ;;  %v280_v18 = vld [vmem:[%s1484_s9 + $0x120] sm:$0xff]  ;;  %v284_v20 = vld [vmem:[%s1484_s9 + $0x130] sm:$0xff] }
  0x20   : > { %281 = vst [vmem:[%s1489_s10 + $0x90] sm:$0xff] %v280_v18  ;;  %283 = vst [vmem:[%s1489_s10 + $0x98] sm:$0xff] %v282_v19  ;;  %v286_v21 = vld [vmem:[%s1484_s9 + $0x150] sm:$0xff]  ;;  %v288_v22 = vld [vmem:[%s1484_s9 + $0x158] sm:$0xff] }
  0x21   : > { %285 = vst [vmem:[%s1489_s10 + $0xa0] sm:$0xff] %v284_v20  ;;  %v290_v23 = vld [vmem:[%s1484_s9 + $0x160] sm:$0xff]  ;;  %287 = vst [vmem:[%s1489_s10 + $0xa8] sm:$0xff] %v286_v21  ;;  %v294_v25 = vld [vmem:[%s1484_s9 + $0x188] sm:$0xff] }
  0x22   : > { %289 = vst [vmem:[%s1489_s10 + $0xb0] sm:$0xff] %v288_v22  ;;  %291 = vst [vmem:[%s1489_s10 + $0xb8] sm:$0xff] %v290_v23  ;;  %v292_v24 = vld [vmem:[%s1484_s9 + $0x180] sm:$0xff]  ;;  %v296_v26 = vld [vmem:[%s1484_s9 + $0x190] sm:$0xff] }
  0x23   : > { %293 = vst [vmem:[%s1489_s10 + $0xc0] sm:$0xff] %v292_v24  ;;  %295 = vst [vmem:[%s1489_s10 + $0xc8] sm:$0xff] %v294_v25  ;;  %v298_v27 = vld [vmem:[%s1484_s9 + $0x1b0] sm:$0xff]  ;;  %v300_v28 = vld [vmem:[%s1484_s9 + $0x1b8] sm:$0xff] }
  0x24   : > { %297 = vst [vmem:[%s1489_s10 + $0xd0] sm:$0xff] %v296_v26  ;;  %v302_v29 = vld [vmem:[%s1484_s9 + $0x1c0] sm:$0xff]  ;;  %299 = vst [vmem:[%s1489_s10 + $0xd8] sm:$0xff] %v298_v27  ;;  %v306_v31 = vld [vmem:[%s1484_s9 + $0x1e8] sm:$0xff] }
  0x25   : > { %301 = vst [vmem:[%s1489_s10 + $0xe0] sm:$0xff] %v300_v28  ;;  %303 = vst [vmem:[%s1489_s10 + $0xe8] sm:$0xff] %v302_v29  ;;  %v304_v30 = vld [vmem:[%s1484_s9 + $0x1e0] sm:$0xff]  ;;  %v308_v32 = vld [vmem:[%s1484_s9 + $0x1f0] sm:$0xff] }
  0x26   : > { %305 = vst [vmem:[%s1489_s10 + $0xf0] sm:$0xff] %v304_v30  ;;  %307 = vst [vmem:[%s1489_s10 + $0xf8] sm:$0xff] %v306_v31  ;;  %v310_v33 = vld [vmem:[%s1484_s9 + $0x210] sm:$0xff]  ;;  %v312_v34 = vld [vmem:[%s1484_s9 + $0x218] sm:$0xff] }
  0x27   : > { %309 = vst [vmem:[%s1489_s10 + $0x100] sm:$0xff] %v308_v32  ;;  %v314_v35 = vld [vmem:[%s1484_s9 + $0x220] sm:$0xff]  ;;  %311 = vst [vmem:[%s1489_s10 + $0x108] sm:$0xff] %v310_v33  ;;  %v318_v37 = vld [vmem:[%s1484_s9 + $0x248] sm:$0xff] }
  0x28   : > { %313 = vst [vmem:[%s1489_s10 + $0x110] sm:$0xff] %v312_v34  ;;  %315 = vst [vmem:[%s1489_s10 + $0x118] sm:$0xff] %v314_v35  ;;  %v316_v36 = vld [vmem:[%s1484_s9 + $0x240] sm:$0xff]  ;;  %v320_v38 = vld [vmem:[%s1484_s9 + $0x250] sm:$0xff] }
  0x29   : > { %317 = vst [vmem:[%s1489_s10 + $0x120] sm:$0xff] %v316_v36  ;;  %319 = vst [vmem:[%s1489_s10 + $0x128] sm:$0xff] %v318_v37  ;;  %v322_v39 = vld [vmem:[%s1484_s9 + $0x270] sm:$0xff]  ;;  %v324_v40 = vld [vmem:[%s1484_s9 + $0x278] sm:$0xff] }
  0x2a   : > { %321 = vst [vmem:[%s1489_s10 + $0x130] sm:$0xff] %v320_v38  ;;  %v326_v41 = vld [vmem:[%s1484_s9 + $0x280] sm:$0xff]  ;;  %323 = vst [vmem:[%s1489_s10 + $0x138] sm:$0xff] %v322_v39  ;;  %v330_v43 = vld [vmem:[%s1484_s9 + $0x2a8] sm:$0xff] }
  0x2b   : > { %325 = vst [vmem:[%s1489_s10 + $0x140] sm:$0xff] %v324_v40  ;;  %327 = vst [vmem:[%s1489_s10 + $0x148] sm:$0xff] %v326_v41  ;;  %v328_v42 = vld [vmem:[%s1484_s9 + $0x2a0] sm:$0xff]  ;;  %v332_v44 = vld [vmem:[%s1484_s9 + $0x2b0] sm:$0xff] }
  0x2c   : > { %329 = vst [vmem:[%s1489_s10 + $0x150] sm:$0xff] %v328_v42  ;;  %331 = vst [vmem:[%s1489_s10 + $0x158] sm:$0xff] %v330_v43  ;;  %v334_v45 = vld [vmem:[%s1484_s9 + $0x2d0] sm:$0xff]  ;;  %v336_v46 = vld [vmem:[%s1484_s9 + $0x2d8] sm:$0xff] }
  0x2d   : > { %333 = vst [vmem:[%s1489_s10 + $0x160] sm:$0xff] %v332_v44  ;;  %v338_v47 = vld [vmem:[%s1484_s9 + $0x2e0] sm:$0xff]  ;;  %335 = vst [vmem:[%s1489_s10 + $0x168] sm:$0xff] %v334_v45 }
  0x2e   : > { %337 = vst [vmem:[%s1489_s10 + $0x170] sm:$0xff] %v336_v46  ;;  %339 = vst [vmem:[%s1489_s10 + $0x178] sm:$0xff] %v338_v47 }
  0x2f PF: > { %p1177_p8 = scmp.ge.s32.totalorder %s1403_s22, 1  ;;  %p352_p9 = scmp.lt.s32.totalorder %s1403_s22, 3 }
  0x31   : > { %p353_p10 = pnand %p1177_p8, %p352_p9 }
  0x32   : > { %v432_v48 = vld [vmem:[%s1688_s0] sm:$0xff] (!%p353_p10)  ;;  %v433_v49 = vld [vmem:[%s1688_s0 + $0x8] sm:$0xff] (!%p353_p10)  ;;  %s359_s15 = sand.u32 (!%p353_p10), 1, %s1387_s18   ;;  %v1405_v20 = vmov (!%p353_p10), 0   ;;  %s408_s30 = smul.u32 (!%p353_p10), 6, %s1395_s20 }
  0x33   : > { %356 = sbr.rel (%p353_p10) target bundleno = 628 (0x274), region = 59  ;;  %434 = vadd.xlane.f32.xlu0 (!%p353_p10), %v432_v48  ;;  %808 = vmatprep.mubr.bf16.mxu0 (!%p353_p10), %v1405_v20  ;;  %v1178_v36 = vld [vmem:[%s1691_s3] ss:$0 sm:$0xff] (!%p353_p10) }
  0x34   : > { %s1246_s16 = smul.u32 (!%p353_p10), 384, %s359_s15  ;;  %851 = vmatprep.mubr.bf16.mxu1 (!%p353_p10), %v1405_v20  ;;  %v1179_v40 = vld [vmem:[%s1692_s4] ss:$0 sm:$0xff] (!%p353_p10)  ;;  %p409_p11 = scmp.lt.s32.totalorder (!%p353_p10), %s408_s30, 11 }
  0x35   : > { %s1247_s9 = smul.u32 (!%p353_p10), 48, %s359_s15 }
  0x36   : > { %s1595_s17 = scalar_lea.vmem (!%p353_p10), [#allocation3], %s1246_s16 }
  0x37   : > { %436 = vadd.xlane.f32.xlu0 (!%p353_p10), %v433_v49  ;;  %v1289_v50 = vld [vmem:[%s1595_s17 + $0x4] ss:$24 sps:$4 sm:$0xff] (!%p353_p10)   ;;  %v1291_v51 = vld [vmem:[%s1595_s17] ss:$24 sps:$4 sm:$0xff] (!%p353_p10)   ;;  %v1295_v54 = vld [vmem:[%s1595_s17 + $0x34] ss:$24 sps:$4 sm:$0xff] (!%p353_p10)  }
  0x38   : > { %776 = vmatprep.subr.bf16.mxu0 (!%p353_p10), %v1289_v50  ;;  %v1292_v52 = vld [vmem:[%s1595_s17 + $0xc] ss:$24 sps:$4 sm:$0xff] (!%p353_p10)   ;;  %v1294_v53 = vld [vmem:[%s1595_s17 + $0x8] ss:$24 sps:$4 sm:$0xff] (!%p353_p10)   ;;  %v1298_v0 = vld [vmem:[%s1595_s17 + $0x3c] ss:$24 sps:$4 sm:$0xff] (!%p353_p10)  }
  0x39   : > { %777 = vmatpush1.bf16.msra.mxu0 (!%p353_p10), %v1291_v51  ;;  %819 = vmatprep.subr.bf16.mxu1 (!%p353_p10), %v1292_v52  ;;  %v1297_v63 = vld [vmem:[%s1595_s17 + $0x30] ss:$24 sps:$4 sm:$0xff] (!%p353_p10)   ;;  %v1301_v2 = vld [vmem:[%s1595_s17 + $0x64] ss:$24 sps:$4 sm:$0xff] (!%p353_p10)   ;;  %v1303_v3 = vld [vmem:[%s1595_s17 + $0x60] ss:$24 sps:$4 sm:$0xff] (!%p353_p10)  }
  0x3a   : > { %820 = vmatpush1.bf16.msra.mxu1 %v1294_v53  ;;  %778 = vmatprep.subr.bf16.mxu0 %v1295_v54  ;;  %v1300_v1 = vld [vmem:[%s1595_s17 + $0x38] ss:$24 sps:$4 sm:$0xff]   ;;  %v1304_v4 = vld [vmem:[%s1595_s17 + $0x6c] ss:$24 sps:$4 sm:$0xff]   ;;  %v1306_v5 = vld [vmem:[%s1595_s17 + $0x68] ss:$24 sps:$4 sm:$0xff]  }
  0x3b   : > { %821 = vmatprep.subr.bf16.mxu1 %v1298_v0  ;;  %v1307_v6 = vld [vmem:[%s1595_s17 + $0x94] ss:$24 sps:$4 sm:$0xff]   ;;  %v1309_v7 = vld [vmem:[%s1595_s17 + $0x90] ss:$24 sps:$4 sm:$0xff]   ;;  %v1313_v10 = vld [vmem:[%s1595_s17 + $0xc4] ss:$24 sps:$4 sm:$0xff]  }
  0x3c   : > { %v1310_v8 = vld [vmem:[%s1595_s17 + $0x9c] ss:$24 sps:$4 sm:$0xff]   ;;  %v1312_v9 = vld [vmem:[%s1595_s17 + $0x98] ss:$24 sps:$4 sm:$0xff]   ;;  %v1316_v12 = vld [vmem:[%s1595_s17 + $0xcc] ss:$24 sps:$4 sm:$0xff]  }
  0x3d   : > { %779 = vmatpush1.bf16.msra.mxu0 %v1297_v63  ;;  %v1315_v11 = vld [vmem:[%s1595_s17 + $0xc0] ss:$24 sps:$4 sm:$0xff]   ;;  %v1319_v14 = vld [vmem:[%s1595_s17 + $0xf4] ss:$24 sps:$4 sm:$0xff]   ;;  %v1321_v16 = vld [vmem:[%s1595_s17 + $0xf0] ss:$24 sps:$4 sm:$0xff]  }
  0x3e   : > { %822 = vmatpush1.bf16.msra.mxu1 %v1300_v1  ;;  %780 = vmatprep.subr.bf16.mxu0 %v1301_v2  ;;  %v1318_v13 = vld [vmem:[%s1595_s17 + $0xc8] ss:$24 sps:$4 sm:$0xff]   ;;  %v1322_v15 = vld [vmem:[%s1595_s17 + $0xfc] ss:$24 sps:$4 sm:$0xff]   ;;  %v1324_v17 = vld [vmem:[%s1595_s17 + $0xf8] ss:$24 sps:$4 sm:$0xff]  }
  0x3f   : > { %823 = vmatprep.subr.bf16.mxu1 %v1304_v4  ;;  %v1325_v18 = vld [vmem:[%s1595_s17 + $0x124] ss:$24 sps:$4 sm:$0xff]   ;;  %v1327_v21 = vld [vmem:[%s1595_s17 + $0x120] ss:$24 sps:$4 sm:$0xff]   ;;  %v1331_v23 = vld [vmem:[%s1595_s17 + $0x154] ss:$24 sps:$4 sm:$0xff]  }
  0x40   : > { %v1328_v19 = vld [vmem:[%s1595_s17 + $0x12c] ss:$24 sps:$4 sm:$0xff]   ;;  %v1330_v22 = vld [vmem:[%s1595_s17 + $0x128] ss:$24 sps:$4 sm:$0xff]   ;;  %v1334_v24 = vld [vmem:[%s1595_s17 + $0x15c] ss:$24 sps:$4 sm:$0xff]  }
  0x41   : > { %781 = vmatpush1.bf16.msra.mxu0 %v1303_v3  ;;  %v1333_v25 = vld [vmem:[%s1595_s17 + $0x150] ss:$24 sps:$4 sm:$0xff]   ;;  %v1339_v27 = vld [vmem:[%s1595_s17 + $0x14] ss:$24 sps:$4 sm:$0xff]   ;;  %v1342_v46 = vld [vmem:[%s1595_s17 + $0x44] ss:$24 sps:$4 sm:$0xff]  }
  0x42   : > { %824 = vmatpush1.bf16.msra.mxu1 %v1306_v5  ;;  %782 = vmatprep.subr.bf16.mxu0 %v1307_v6  ;;  %v1336_v26 = vld [vmem:[%s1595_s17 + $0x158] ss:$24 sps:$4 sm:$0xff]   ;;  %v1348_v50 = vld [vmem:[%s1595_s17 + $0xa4] ss:$24 sps:$4 sm:$0xff]   ;;  %v1351_v52 = vld [vmem:[%s1595_s17 + $0xd4] ss:$24 sps:$4 sm:$0xff]  }
  0x43   : > { %825 = vmatprep.subr.bf16.mxu1 %v1310_v8  ;;  %v1337_v44 = vld [vmem:[%s1595_s17 + $0x10] ss:$24 sps:$4 sm:$0xff]   ;;  %v1340_v47 = vld [vmem:[%s1595_s17 + $0x40] ss:$24 sps:$4 sm:$0xff]   ;;  %v1354_v54 = vld [vmem:[%s1595_s17 + $0x104] ss:$24 sps:$4 sm:$0xff]  }
  0x44   : > { %v1346_v51 = vld [vmem:[%s1595_s17 + $0xa0] ss:$24 sps:$4 sm:$0xff]   ;;  %v1349_v53 = vld [vmem:[%s1595_s17 + $0xd0] ss:$24 sps:$4 sm:$0xff]   ;;  %s1702_s30 = smov (!%p409_p11, %s408_s30), 11  ;;  %s396_s18 = scalar_lea.vmem [#allocation4], %s1247_s9 }
  0x45   : > { %783 = vmatpush1.bf16.msra.mxu0 %v1309_v7  ;;  %s411_s8 = scalar_lea.vmem %s1690_s2, %s1702_s30  ;;  %s1244_s10 = smul.u32 (%p1471_p6), 24, %s1395_s20 }
  0x46   : > { %826 = vmatpush1.bf16.msra.mxu1 %v1312_v9  ;;  %784 = vmatprep.subr.bf16.mxu0 %v1313_v10  ;;  %v944_v0 = vld [vmem:[%s411_s8] sm:$0x3f] }
  0x47   : > { %827 = vmatprep.subr.bf16.mxu1 %v1316_v12  ;;  %s1042_s13 = scalar_lea.vmem (%p1471_p6), %s1693_s5, %s1244_s10 }
  0x49   : > { %785 = vmatpush1.bf16.msra.mxu0 %v1315_v11 }
  0x4a   : > { %828 = vmatpush1.bf16.msra.mxu1 %v1318_v13  ;;  %786 = vmatprep.subr.bf16.mxu0 %v1319_v14 }
  0x4b   : > { %829 = vmatprep.subr.bf16.mxu1 %v1322_v15 }
  0x4d   : > { %787 = vmatpush1.bf16.msra.mxu0 %v1321_v16 }
  0x4e   : > { %830 = vmatpush1.bf16.msra.mxu1 %v1324_v17  ;;  %788 = vmatprep.subr.bf16.mxu0 %v1325_v18 }
  0x4f   : > { %831 = vmatprep.subr.bf16.mxu1 %v1328_v19 }
  0x51   : > { %789 = vmatpush1.bf16.msra.mxu0 %v1327_v21 }
  0x52   : > { %832 = vmatpush1.bf16.msra.mxu1 %v1330_v22  ;;  %790 = vmatprep.subr.bf16.mxu0 %v1331_v23 }
  0x53   : > { %833 = vmatprep.subr.bf16.mxu1 %v1334_v24 }
  0x55   : > { %791 = vmatpush1.bf16.msra.mxu0 %v1333_v25 }
  0x56   : > { %834 = vmatpush1.bf16.msra.mxu1 %v1336_v26  ;;  %862 = vmatprep.subr.bf16.mxu0 %v1339_v27 }
  0xc0   : > { %v435_v55 = vpop.xlane.xlu0 %434 }
  0xc1   : > { %v439_v56 = vmul.f32 0.0078125, %v435_v55  ;;  %v1352_v55 = vld [vmem:[%s1595_s17 + $0x100] ss:$24 sps:$4 sm:$0xff]  }
  0xc3   : > { %v1602_v57 = vsub.f32 %v432_v48, %v439_v56  ;;  %v1345_v48 = vld [vmem:[%s1595_s17 + $0x74] ss:$24 sps:$4 sm:$0xff]  }
  0xc4   : > { %v437_v58 = vpop.xlane.xlu0 %436  ;;  %v1357_v56 = vld [vmem:[%s1595_s17 + $0x134] ss:$24 sps:$4 sm:$0xff]  }
  0xc5   : > { %v440_v59 = vmul.f32 0.0078125, %v437_v58  ;;  %v443_v60 = vmul.f32 %v1602_v57, %v1602_v57  ;;  %v1360_v58 = vld [vmem:[%s1595_s17 + $0x164] ss:$24 sps:$4 sm:$0xff]  }
  0xc7   : > { %v1606_v61 = vsub.f32 %v433_v49, %v440_v59  ;;  %445 = vadd.xlane.f32.xlu1 %v443_v60  ;;  %v1343_v49 = vld [vmem:[%s1595_s17 + $0x70] ss:$24 sps:$4 sm:$0xff]   ;;  %v1358_v59 = vld [vmem:[%s1595_s17 + $0x160] ss:$24 sps:$4 sm:$0xff]   ;;  %v946_v60 = vlaneseq }
  0xc9   : > { %v444_v62 = vmul.f32 %v1606_v61, %v1606_v61 }
  0xcb   : > { %447 = vadd.xlane.f32.xlu1 %v444_v62 }
 0x154   : > { %v446_v28 = vpop.xlane.xlu1 %445 }
 0x155   : > { %v449_v29 = vmul.f32 0.0078125, %v446_v28 }
 0x157   : > { %v451_v30 = vadd.f32 1e-05, %v449_v29 }
 0x158   : > { %v448_v31 = vpop.xlane.xlu1 %447 }
 0x159   : > { %1361 = vrsqrt.f32 %v451_v30  ;;  %v450_v32 = vmul.f32 0.0078125, %v448_v31 }
 0x15b   : > { %v452_v33 = vadd.f32 1e-05, %v450_v32 }
 0x15d   : > { %1363 = vrsqrt.f32 %v452_v33 }
 0x163   : > { %v1362_v34 = vpop.eup %1361 }
 0x164   : > { %v455_v35 = vmul.f32 %v1362_v34, %v1602_v57  ;;  %v1355_v57 = vld [vmem:[%s1595_s17 + $0x130] ss:$24 sps:$4 sm:$0xff]  }
 0x166   : > { %v464_v39 = vmul.f32 %v1178_v36, %v455_v35 }
 0x167   : > { %v1364_v37 = vpop.eup %1363 }
 0x168   : > { %v456_v38 = vmul.f32 %v1364_v37, %v1606_v61  ;;  %v473_v42 = vadd.f32 %v1179_v40, %v464_v39  ;;  %v947_v61 = vshrl.u32 %v946_v60, 7 }
 0x16a   : > { %v465_v41 = vmul.f32 %v1178_v36, %v456_v38  ;;  %v948_v62 = vsub.s32 0, %v947_v61  ;;  %v956_v63 = vsub.s32 2, %v947_v61  ;;  %v952_v1 = vsub.s32 1, %v947_v61 }
 0x16b   : > { %v960_v2 = vsub.s32 3, %v947_v61  ;;  %v964_v27 = vsub.s32 4, %v947_v61  ;;  %v968_v28 = vsub.s32 5, %v947_v61 }
 0x16c   : > { %v474_v43 = vadd.f32 %v1179_v40, %v465_v41  ;;  %v949_v3 = vrot.slane %v944_v0, %v948_v62  ;;  %v957_v4 = vrot.slane %v944_v0, %v956_v63  ;;  %v953_v5 = vrot.slane %v944_v0, %v952_v1 }
 0x16d   : > { %v961_v6 = vrot.slane %v944_v0, %v960_v2  ;;  %v965_v29 = vrot.slane %v944_v0, %v964_v27  ;;  %v969_v30 = vrot.slane %v944_v0, %v968_v28 }
 0x16e   : > { %v475_v45 = vpack.c.bf16 %v474_v43, %v473_v42 }
 0x170   : > { %809 = vmatmul.mubr.bf16.vlgmr.msra.gmra.mrb[0].mxu0 %v475_v45  ;;  %852 = vmatmul.mubr.bf16.vlgmr.msra.gmra.mrb[0].mxu1 %v475_v45 }
 0x171   : > { %863 = vmatpush1.bf16.msra.mxu0 %v1337_v44  ;;  %894 = vmatprep.mubr.bf16.mxu0 %v1405_v20 }
 0x172   : > { %864 = vmatprep.subr.bf16.mxu0 %v1342_v46 }
 0x175   : > { %865 = vmatpush1.bf16.msra.mxu0 %v1340_v47 }
 0x176   : > { %866 = vmatprep.subr.bf16.mxu0 %v1345_v48 }
 0x179   : > { %867 = vmatpush1.bf16.msra.mxu0 %v1343_v49 }
 0x17a   : > { %868 = vmatprep.subr.bf16.mxu0 %v1348_v50 }
 0x17d   : > { %869 = vmatpush1.bf16.msra.mxu0 %v1346_v51 }
 0x17e   : > { %870 = vmatprep.subr.bf16.mxu0 %v1351_v52 }
 0x181   : > { %871 = vmatpush1.bf16.msra.mxu0 %v1349_v53 }
 0x182   : > { %872 = vmatprep.subr.bf16.mxu0 %v1354_v54 }
 0x185   : > { %873 = vmatpush1.bf16.msra.mxu0 %v1352_v55 }
 0x186   : > { %874 = vmatprep.subr.bf16.mxu0 %v1357_v56 }
 0x189   : > { %875 = vmatpush1.bf16.msra.mxu0 %v1355_v57 }
 0x18a   : > { %876 = vmatprep.subr.bf16.mxu0 %v1360_v58 }
 0x18d   : > { %877 = vmatpush1.bf16.msra.mxu0 %v1358_v59 }
 0x190   : > { %895 = vmatmul.mubr.bf16.vlgmr.msra.gmra.mrb[4].mxu0 %v475_v45 }
 0x243   : > { %v810_v7 = vpop.f32.mrb[0].mxu0  ;;  %v853_v8 = vpop.f32.mrb[0].mxu1 }
 0x244   : > { %v976_v9 = vadd.f32 %v949_v3, %v810_v7  ;;  %v978_v10 = vadd.f32 %v957_v4, %v853_v8  ;;  %v812_v11 = vpop.f32.mrb[1].mxu0  ;;  %v855_v12 = vpop.f32.mrb[1].mxu1 }
 0x245   : > { %v977_v13 = vadd.f32 %v953_v5, %v812_v11  ;;  %v979_v14 = vadd.f32 %v961_v6, %v855_v12  ;;  %v814_v15 = vpop.f32.mrb[2].mxu0  ;;  %v857_v16 = vpop.f32.mrb[2].mxu1 }
 0x246   : > { %v982_v17 = vadd.f32 %v949_v3, %v814_v15  ;;  %v984_v18 = vadd.f32 %v957_v4, %v857_v16  ;;  %v816_v19 = vpop.f32.mrb[3].mxu0  ;;  %v859_v20 = vpop.f32.mrb[3].mxu1 }
 0x247   : > { %v1238_v21 = vpack.c.bf16 %v977_v13, %v976_v9  ;;  %v1239_v22 = vpack.c.bf16 %v979_v14, %v978_v10  ;;  %v983_v23 = vadd.f32 %v953_v5, %v816_v19  ;;  %v985_v24 = vadd.f32 %v961_v6, %v859_v20 }
 0x249   : > { %1024 = vst [vmem:[%s396_s18] sm:$0xff] %v1238_v21  ;;  %1025 = vst [vmem:[%s396_s18 + $0x8] sm:$0xff] %v1239_v22  ;;  %v1241_v25 = vpack.c.bf16 %v983_v23, %v982_v17  ;;  %v1242_v26 = vpack.c.bf16 %v985_v24, %v984_v18 }
 0x24b   : > { %1027 = vst [vmem:[%s396_s18 + $0x18] sm:$0xff] %v1241_v25  ;;  %1028 = vst [vmem:[%s396_s18 + $0x20] sm:$0xff] %v1242_v26 }
 0x250   : > { %v1055_v41 = vld [vmem:[%s396_s18] sm:$0xff] (%p1471_p6)  ;;  %v1057_v42 = vld [vmem:[%s396_s18 + $0x8] sm:$0xff] (%p1471_p6) }
 0x251   : > { %1056 = vst [vmem:[%s1042_s13] sm:$0xff] (%p1471_p6), %v1055_v41  ;;  %1058 = vst [vmem:[%s1042_s13 + $0x8] sm:$0xff] (%p1471_p6), %v1057_v42 }
 0x252   : > { %v1061_v44 = vld [vmem:[%s396_s18 + $0x18] sm:$0xff] (%p1471_p6)  ;;  %v1063_v45 = vld [vmem:[%s396_s18 + $0x20] sm:$0xff] (%p1471_p6) }
 0x253   : > { %1062 = vst [vmem:[%s1042_s13 + $0x30] sm:$0xff] (%p1471_p6), %v1061_v44  ;;  %1064 = vst [vmem:[%s1042_s13 + $0x38] sm:$0xff] (%p1471_p6), %v1063_v45 }
 0x263   : > { %v896_v31 = vpop.f32.mrb[4].mxu0 }
 0x264   : > { %v980_v32 = vadd.f32 %v965_v29, %v896_v31  ;;  %v898_v33 = vpop.f32.mrb[5].mxu0 }
 0x265   : > { %v981_v34 = vadd.f32 %v969_v30, %v898_v33  ;;  %v900_v35 = vpop.f32.mrb[6].mxu0  ;;  %1036 = sbr.rel (!%p1471_p6) target bundleno = 628 (0x274), region = 75 }
 0x266   : > { %v986_v36 = vadd.f32 %v965_v29, %v900_v35  ;;  %v902_v37 = vpop.f32.mrb[7].mxu0 }
 0x267   : > { %v1240_v38 = vpack.c.bf16 %v981_v34, %v980_v32  ;;  %v987_v39 = vadd.f32 %v969_v30, %v902_v37 }
 0x269   : > { %1026 = vst [vmem:[%s396_s18 + $0x10] sm:$0xff] %v1240_v38  ;;  %v1243_v40 = vpack.c.bf16 %v987_v39, %v986_v36 }
 0x26b   : > { %1029 = vst [vmem:[%s396_s18 + $0x28] sm:$0xff] %v1243_v40 }
 0x270   : > { %v1059_v43 = vld [vmem:[%s396_s18 + $0x10] sm:$0xff] }
 0x271   : > { %1060 = vst [vmem:[%s1042_s13 + $0x10] sm:$0xff] %v1059_v43 }
 0x272   : > { %v1065_v46 = vld [vmem:[%s396_s18 + $0x28] sm:$0xff] }
 0x273   : > { %1066 = vst [vmem:[%s1042_s13 + $0x40] sm:$0xff] %v1065_v46 }
 0x274 PF: > { %s15_s22 = sadd.s32 1, %s1403_s22   ;;  %s1695_s18 = smov %s1391_s19 }
 0x275   : > { %p12_p12 = scmp.ge.s32.totalorder %s15_s22, 4   ;;  %s1696_s19 = smov %s1476_s28 }
 0x276   : > { %s1697_s20 = smov %s1399_s21  ;;  %s1698_s21 = smov %s1700_s23 }
 0x277   :  { %14 = sbr.rel (!%p12_p12) target bundleno = 3 (0x3), region = 135 }

// kernel: vit_forward.15
= control target key start
LH: loop header
LB: loop body
LE: loop exit
PB: predicated region body
PF: predicated region fallthrough
CT: control target
= control target key end

     0   :  { %s683_s1 = inlined_call_operand.vmem [shape: bf16[512,128], index: 1, kind: input, shape index: {}]   ;;  %s684_s0 = inlined_call_operand.vmem [shape: bf16[16,512], index: 0, kind: input, shape index: {}]   ;;  %s685_s2 = inlined_call_operand.vmem [shape: f32[1,128], index: 2, kind: input, shape index: {}]   ;;  %s686_s3 = inlined_call_operand.vmem [shape: f32[16,128], index: 3, kind: input, shape index: {}]   ;;  %s687_s4 = inlined_call_operand.vmem [shape: f32[16,128], index: 4, kind: output, shape index: {}]  }
   0x1   :  { %v497_v0 = vld [vmem:[%s683_s1 + $0x40] sm:$0xff]   ;;  %v501_v4 = vld [vmem:[%s683_s1 + $0x48] sm:$0xff]   ;;  %v505_v8 = vld [vmem:[%s683_s1 + $0x50] sm:$0xff]  }
   0x2   :  { %v498_v1 = vld [vmem:[%s683_s1 + $0xc0] sm:$0xff]   ;;  %453 = vmatprep.subr.bf16.mxu0 %v497_v0  ;;  %v502_v5 = vld [vmem:[%s683_s1 + $0xc8] sm:$0xff]   ;;  %v506_v9 = vld [vmem:[%s683_s1 + $0xd0] sm:$0xff]  }
   0x3   :  { %v499_v2 = vld [vmem:[%s683_s1] sm:$0xff]   ;;  %475 = vmatprep.subr.bf16.mxu1 %v498_v1  ;;  %v503_v6 = vld [vmem:[%s683_s1 + $0x8] sm:$0xff]   ;;  %v507_v10 = vld [vmem:[%s683_s1 + $0x10] sm:$0xff]  }
   0x4   :  { %v500_v3 = vld [vmem:[%s683_s1 + $0x80] sm:$0xff]   ;;  %454 = vmatpush3.bf16.msra.mxu0 %v499_v2  ;;  %v504_v7 = vld [vmem:[%s683_s1 + $0x88] sm:$0xff]   ;;  %v508_v11 = vld [vmem:[%s683_s1 + $0x90] sm:$0xff]  }
   0x5   :  { %476 = vmatpush3.bf16.msra.mxu1 %v500_v3  ;;  %455 = vmatprep.subr.bf16.mxu0 %v501_v4  ;;  %v509_v12 = vld [vmem:[%s683_s1 + $0x58] sm:$0xff]   ;;  %v513_v16 = vld [vmem:[%s683_s1 + $0x60] sm:$0xff]   ;;  %v517_v20 = vld [vmem:[%s683_s1 + $0x68] sm:$0xff]  }
   0x6   :  { %477 = vmatprep.subr.bf16.mxu1 %v502_v5  ;;  %v510_v13 = vld [vmem:[%s683_s1 + $0xd8] sm:$0xff]   ;;  %v514_v17 = vld [vmem:[%s683_s1 + $0xe0] sm:$0xff]   ;;  %v518_v21 = vld [vmem:[%s683_s1 + $0xe8] sm:$0xff]  }
   0x7   :  { %v511_v14 = vld [vmem:[%s683_s1 + $0x18] sm:$0xff]   ;;  %v515_v18 = vld [vmem:[%s683_s1 + $0x20] sm:$0xff]   ;;  %v519_v22 = vld [vmem:[%s683_s1 + $0x28] sm:$0xff]  }
   0x8   :  { %456 = vmatpush3.bf16.msra.mxu0 %v503_v6  ;;  %v512_v15 = vld [vmem:[%s683_s1 + $0x98] sm:$0xff]   ;;  %v516_v19 = vld [vmem:[%s683_s1 + $0xa0] sm:$0xff]   ;;  %v520_v23 = vld [vmem:[%s683_s1 + $0xa8] sm:$0xff]  }
   0x9   :  { %478 = vmatpush3.bf16.msra.mxu1 %v504_v7  ;;  %457 = vmatprep.subr.bf16.mxu0 %v505_v8  ;;  %v521_v24 = vld [vmem:[%s683_s1 + $0x70] sm:$0xff]   ;;  %v525_v28 = vld [vmem:[%s683_s1 + $0x78] sm:$0xff]   ;;  %v452_v45 = vld [vmem:[%s685_s2] ss:$0 sm:$0xff] }
   0xa   :  { %479 = vmatprep.subr.bf16.mxu1 %v506_v9  ;;  %v522_v25 = vld [vmem:[%s683_s1 + $0xf0] sm:$0xff]   ;;  %v526_v29 = vld [vmem:[%s683_s1 + $0xf8] sm:$0xff]   ;;  %v406_v50 = vld [vmem:[%s686_s3] sm:$0xff] }
   0xb   :  { %v523_v26 = vld [vmem:[%s683_s1 + $0x30] sm:$0xff]   ;;  %v527_v30 = vld [vmem:[%s683_s1 + $0x38] sm:$0xff]   ;;  %v407_v53 = vld [vmem:[%s686_s3 + $0x8] sm:$0xff] }
   0xc   :  { %458 = vmatpush3.bf16.msra.mxu0 %v507_v10  ;;  %v524_v27 = vld [vmem:[%s683_s1 + $0xb0] sm:$0xff]   ;;  %v528_v31 = vld [vmem:[%s683_s1 + $0xb8] sm:$0xff]  }
   0xd   :  { %480 = vmatpush3.bf16.msra.mxu1 %v508_v11  ;;  %459 = vmatprep.subr.bf16.mxu0 %v509_v12  ;;  %v529_v32 = vld [vmem:[%s684_s0] ss:$16 sps:$4 sm:$0xff]   ;;  %v531_v33 = vld [vmem:[%s684_s0 + $0x4] ss:$16 sps:$4 sm:$0xff]   ;;  %v532_v34 = vld [vmem:[%s684_s0 + $0x8] ss:$16 sps:$4 sm:$0xff]  }
   0xe   :  { %481 = vmatprep.subr.bf16.mxu1 %v510_v13  ;;  %v534_v35 = vld [vmem:[%s684_s0 + $0xc] ss:$16 sps:$4 sm:$0xff]   ;;  %338 = vmatprep.mubr.bf16.mxu0 %v531_v33 }
   0xf   :  { %379 = vmatprep.mubr.bf16.mxu1 %v534_v35 }
  0x10   :  { %460 = vmatpush3.bf16.msra.mxu0 %v511_v14 }
  0x11   :  { %482 = vmatpush3.bf16.msra.mxu1 %v512_v15  ;;  %461 = vmatprep.subr.bf16.mxu0 %v513_v16 }
  0x12   :  { %483 = vmatprep.subr.bf16.mxu1 %v514_v17 }
  0x14   :  { %462 = vmatpush3.bf16.msra.mxu0 %v515_v18 }
  0x15   :  { %484 = vmatpush3.bf16.msra.mxu1 %v516_v19  ;;  %463 = vmatprep.subr.bf16.mxu0 %v517_v20 }
  0x16   :  { %485 = vmatprep.subr.bf16.mxu1 %v518_v21 }
  0x18   :  { %464 = vmatpush3.bf16.msra.mxu0 %v519_v22 }
  0x19   :  { %486 = vmatpush3.bf16.msra.mxu1 %v520_v23  ;;  %465 = vmatprep.subr.bf16.mxu0 %v521_v24 }
  0x1a   :  { %487 = vmatprep.subr.bf16.mxu1 %v522_v25 }
  0x1c   :  { %466 = vmatpush3.bf16.msra.mxu0 %v523_v26 }
  0x1d   :  { %488 = vmatpush3.bf16.msra.mxu1 %v524_v27  ;;  %467 = vmatprep.subr.bf16.mxu0 %v525_v28 }
  0x1e   :  { %489 = vmatprep.subr.bf16.mxu1 %v526_v29 }
  0x20   :  { %468 = vmatpush3.bf16.msra.mxu0 %v527_v30 }
  0x21   :  { %490 = vmatpush3.bf16.msra.mxu1 %v528_v31 }
  0x23   :  { %339 = vmatmul.mubr.bf16.vlgmr.msra.gmra.mrb[0].mxu0 %v529_v32 }
  0x24   :  { %380 = vmatmul.mubr.bf16.vlgmr.msra.gmra.mrb[0].mxu1 %v532_v34 }
  0xf6   :  { %v469_v36 = vpop.f32.mrb[0].mxu0 }
  0xf7   :  { %v491_v37 = vpop.f32.mrb[0].mxu1  ;;  %v470_v38 = vpop.f32.mrb[1].mxu0 }
  0xf8   :  { %v471_v39 = vadd.f32 %v470_v38, %v469_v36  ;;  %v492_v40 = vpop.f32.mrb[1].mxu1  ;;  %v472_v41 = vpop.f32.mrb[2].mxu0 }
  0xf9   :  { %v493_v42 = vadd.f32 %v492_v40, %v491_v37  ;;  %v494_v43 = vpop.f32.mrb[2].mxu1  ;;  %v473_v44 = vpop.f32.mrb[3].mxu0 }
  0xfa   :  { %v474_v46 = vadd.f32 %v473_v44, %v472_v41  ;;  %v495_v47 = vpop.f32.mrb[3].mxu1 }
  0xfb   :  { %v382_v48 = vadd.f32 %v493_v42, %v471_v39  ;;  %v496_v49 = vadd.f32 %v495_v47, %v494_v43 }
  0xfd   :  { %v404_v51 = vadd.f32 %v452_v45, %v382_v48  ;;  %v385_v52 = vadd.f32 %v496_v49, %v474_v46 }
  0xff   :  { %v408_v54 = vadd.f32 %v406_v50, %v404_v51  ;;  %v405_v55 = vadd.f32 %v452_v45, %v385_v52 }
 0x101   :  { %410 = vst [vmem:[%s687_s4] sm:$0xff] %v408_v54  ;;  %v409_v56 = vadd.f32 %v407_v53, %v405_v55 }
 0x103   :  { %411 = vst [vmem:[%s687_s4 + $0x8] sm:$0xff] %v409_v56 }

// kernel: vit_forward.17
= control target key start
LH: loop header
LB: loop body
LE: loop exit
PB: predicated region body
PF: predicated region fallthrough
CT: control target
= control target key end

     0   :  { %s389_s1 = inlined_call_operand.vmem [shape: bf16[256,128], index: 1, kind: input, shape index: {}]   ;;  %s390_s0 = inlined_call_operand.vmem [shape: bf16[16,256], index: 0, kind: input, shape index: {}]   ;;  %s391_s2 = inlined_call_operand.vmem [shape: f32[1,128], index: 2, kind: input, shape index: {}]   ;;  %s392_s3 = inlined_call_operand.vmem [shape: f32[16,128], index: 3, kind: input, shape index: {}]   ;;  %s393_s4 = inlined_call_operand.vmem [shape: f32[16,128], index: 4, kind: output, shape index: {}]  }
   0x1   :  { %v276_v0 = vld [vmem:[%s389_s1 + $0x40] sm:$0xff]   ;;  %v278_v2 = vld [vmem:[%s389_s1 + $0x48] sm:$0xff]   ;;  %v280_v4 = vld [vmem:[%s389_s1 + $0x50] sm:$0xff]  }
   0x2   :  { %v277_v1 = vld [vmem:[%s389_s1] sm:$0xff]   ;;  %254 = vmatprep.subr.bf16.mxu0 %v276_v0  ;;  %v279_v3 = vld [vmem:[%s389_s1 + $0x8] sm:$0xff]   ;;  %v281_v5 = vld [vmem:[%s389_s1 + $0x10] sm:$0xff]  }
   0x3   :  { %255 = vmatpush3.bf16.msra.mxu0 %v277_v1  ;;  %v282_v6 = vld [vmem:[%s389_s1 + $0x58] sm:$0xff]   ;;  %v284_v8 = vld [vmem:[%s389_s1 + $0x60] sm:$0xff]   ;;  %v286_v10 = vld [vmem:[%s389_s1 + $0x68] sm:$0xff]  }
   0x4   :  { %256 = vmatprep.subr.bf16.mxu0 %v278_v2  ;;  %v283_v7 = vld [vmem:[%s389_s1 + $0x18] sm:$0xff]   ;;  %v285_v9 = vld [vmem:[%s389_s1 + $0x20] sm:$0xff]   ;;  %v287_v12 = vld [vmem:[%s389_s1 + $0x28] sm:$0xff]  }
   0x5   :  { %v294_v11 = vld [vmem:[%s390_s0 + $0x4] ss:$8 sps:$4 sm:$0xff]   ;;  %v288_v13 = vld [vmem:[%s389_s1 + $0x70] sm:$0xff]   ;;  %v290_v15 = vld [vmem:[%s389_s1 + $0x78] sm:$0xff]  }
   0x6   :  { %198 = vmatprep.mubr.bf16.mxu0 %v294_v11  ;;  %v289_v14 = vld [vmem:[%s389_s1 + $0x30] sm:$0xff]   ;;  %v291_v16 = vld [vmem:[%s389_s1 + $0x38] sm:$0xff]   ;;  %v292_v17 = vld [vmem:[%s390_s0] ss:$8 sps:$4 sm:$0xff]  }
   0x7   :  { %257 = vmatpush3.bf16.msra.mxu0 %v279_v3  ;;  %v253_v20 = vld [vmem:[%s391_s2] ss:$0 sm:$0xff]  ;;  %v226_v27 = vld [vmem:[%s392_s3 + $0x8] sm:$0xff] }
   0x8   :  { %258 = vmatprep.subr.bf16.mxu0 %v280_v4  ;;  %v225_v23 = vld [vmem:[%s392_s3] sm:$0xff] }
   0xb   :  { %259 = vmatpush3.bf16.msra.mxu0 %v281_v5 }
   0xc   :  { %260 = vmatprep.subr.bf16.mxu0 %v282_v6 }
   0xf   :  { %261 = vmatpush3.bf16.msra.mxu0 %v283_v7 }
  0x10   :  { %262 = vmatprep.subr.bf16.mxu0 %v284_v8 }
  0x13   :  { %263 = vmatpush3.bf16.msra.mxu0 %v285_v9 }
  0x14   :  { %264 = vmatprep.subr.bf16.mxu0 %v286_v10 }
  0x17   :  { %265 = vmatpush3.bf16.msra.mxu0 %v287_v12 }
  0x18   :  { %266 = vmatprep.subr.bf16.mxu0 %v288_v13 }
  0x1b   :  { %267 = vmatpush3.bf16.msra.mxu0 %v289_v14 }
  0x1c   :  { %268 = vmatprep.subr.bf16.mxu0 %v290_v15 }
  0x1f   :  { %269 = vmatpush3.bf16.msra.mxu0 %v291_v16 }
  0x22   :  { %199 = vmatmul.mubr.bf16.vlgmr.msra.gmra.mrb[0].mxu0 %v292_v17 }
  0xf5   :  { %v270_v18 = vpop.f32.mrb[0].mxu0 }
  0xf6   :  { %v271_v19 = vpop.f32.mrb[1].mxu0 }
  0xf7   :  { %v272_v21 = vadd.f32 %v271_v19, %v270_v18  ;;  %v273_v22 = vpop.f32.mrb[2].mxu0 }
  0xf8   :  { %v274_v24 = vpop.f32.mrb[3].mxu0 }
  0xf9   :  { %v223_v25 = vadd.f32 %v272_v21, %v253_v20  ;;  %v275_v26 = vadd.f32 %v274_v24, %v273_v22 }
  0xfb   :  { %v227_v28 = vadd.f32 %v225_v23, %v223_v25  ;;  %v224_v29 = vadd.f32 %v275_v26, %v253_v20 }
  0xfd   :  { %229 = vst [vmem:[%s393_s4] sm:$0xff] %v227_v28  ;;  %v228_v30 = vadd.f32 %v226_v27, %v224_v29 }
  0xff   :  { %230 = vst [vmem:[%s393_s4 + $0x8] sm:$0xff] %v228_v30 }

// kernel: vit_forward.23
= control target key start
LH: loop header
LB: loop body
LE: loop exit
PB: predicated region body
PF: predicated region fallthrough
CT: control target
= control target key end

     0   :  { %s107_s0 = inlined_call_operand.vmem [shape: f32[16,128], index: 0, kind: input, shape index: {}]   ;;  %s108_s1 = inlined_call_operand.vmem [shape: f32[1,128], index: 1, kind: input, shape index: {}]   ;;  %s109_s2 = inlined_call_operand.vmem [shape: f32[1,128], index: 2, kind: input, shape index: {}]   ;;  %s110_s3 = inlined_call_operand.vmem [shape: f32[16,128], index: 3, kind: output, shape index: {}]  }
   0x1   :  { %v14_v0 = vld [vmem:[%s107_s0] sm:$0xff]  ;;  %v15_v1 = vld [vmem:[%s107_s0 + $0x8] sm:$0xff] }
   0x2   :  { %16 = vadd.xlane.f32.xlu0 %v14_v0  ;;  %v63_v17 = vld [vmem:[%s108_s1] ss:$0 sm:$0xff] }
   0x3   :  { %v64_v19 = vld [vmem:[%s109_s2] ss:$0 sm:$0xff] }
   0x6   :  { %18 = vadd.xlane.f32.xlu0 %v15_v1 }
  0x8f   :  { %v17_v2 = vpop.xlane.xlu0 %16 }
  0x90   :  { %v21_v3 = vmul.f32 0.0078125, %v17_v2 }
  0x92   :  { %v23_v4 = vsub.f32 %v14_v0, %v21_v3 }
  0x93   :  { %v19_v5 = vpop.xlane.xlu0 %18 }
  0x94   :  { %v22_v6 = vmul.f32 0.0078125, %v19_v5  ;;  %v25_v7 = vmul.f32 %v23_v4, %v23_v4 }
  0x96   :  { %v24_v8 = vsub.f32 %v15_v1, %v22_v6  ;;  %27 = vadd.xlane.f32.xlu1 %v25_v7 }
  0x98   :  { %v26_v9 = vmul.f32 %v24_v8, %v24_v8 }
  0x9a   :  { %29 = vadd.xlane.f32.xlu1 %v26_v9 }
 0x123   :  { %v28_v10 = vpop.xlane.xlu1 %27 }
 0x124   :  { %v31_v11 = vmul.f32 0.0078125, %v28_v10 }
 0x126   :  { %v33_v12 = vadd.f32 1e-05, %v31_v11 }
 0x127   :  { %v30_v13 = vpop.xlane.xlu1 %29 }
 0x128   :  { %65 = vrsqrt.f32 %v33_v12  ;;  %v32_v14 = vmul.f32 0.0078125, %v30_v13 }
 0x12a   :  { %v34_v15 = vadd.f32 1e-05, %v32_v14 }
 0x12c   :  { %67 = vrsqrt.f32 %v34_v15 }
 0x132   :  { %v66_v16 = vpop.eup %65 }
 0x133   :  { %v37_v18 = vmul.f32 %v66_v16, %v23_v4 }
 0x135   :  { %v46_v20 = vmul.f32 %v63_v17, %v37_v18 }
 0x136   :  { %v68_v21 = vpop.eup %67 }
 0x137   :  { %v55_v22 = vadd.f32 %v64_v19, %v46_v20  ;;  %v38_v23 = vmul.f32 %v68_v21, %v24_v8 }
 0x139   :  { %57 = vst [vmem:[%s110_s3] sm:$0xff] %v55_v22  ;;  %v47_v24 = vmul.f32 %v63_v17, %v38_v23 }
 0x13b   :  { %v56_v25 = vadd.f32 %v64_v19, %v47_v24 }
 0x13d   :  { %58 = vst [vmem:[%s110_s3 + $0x8] sm:$0xff] %v56_v25 }

// kernel: vit_forward.16
= control target key start
LH: loop header
LB: loop body
LE: loop exit
PB: predicated region body
PF: predicated region fallthrough
CT: control target
= control target key end

     0   :  { %v360_v21 = vmov 0   ;;  %v233_v44 = vlaneseq  ;;  %s460_s0 = inlined_call_operand.vmem [shape: f32[16,128], index: 0, kind: input, shape index: {}]   ;;  %s461_s1 = inlined_call_operand.vmem [shape: bf16[128,256], index: 1, kind: input, shape index: {}]   ;;  %s462_s3 = inlined_call_operand.vmem [shape: f32[1,128], index: 3, kind: input, shape index: {}]   ;;  %s463_s4 = inlined_call_operand.vmem [shape: f32[1,128], index: 4, kind: input, shape index: {}]   ;;  %s464_s2 = inlined_call_operand.vmem [shape: f32[1,256], index: 2, kind: input, shape index: {}]   ;;  %s465_s5 = inlined_call_operand.vmem [shape: bf16[16,256], index: 5, kind: output, shape index: {}]  }
   0x1   :  { %v29_v0 = vld [vmem:[%s460_s0] sm:$0xff]  ;;  %v30_v1 = vld [vmem:[%s460_s0 + $0x8] sm:$0xff]  ;;  %v327_v4 = vld [vmem:[%s461_s1 + $0x14] ss:$8 sps:$4 sm:$0xff]   ;;  %205 = vmatprep.mubr.bf16.mxu0 %v360_v21 }
   0x2   :  { %31 = vadd.xlane.f32.xlu0 %v29_v0  ;;  %v324_v2 = vld [vmem:[%s461_s1 + $0x4] ss:$8 sps:$4 sm:$0xff]   ;;  %v326_v3 = vld [vmem:[%s461_s1] ss:$8 sps:$4 sm:$0xff]   ;;  %v329_v13 = vld [vmem:[%s461_s1 + $0x10] ss:$8 sps:$4 sm:$0xff]  }
   0x3   :  { %173 = vmatprep.subr.bf16.mxu0 %v324_v2  ;;  %v330_v14 = vld [vmem:[%s461_s1 + $0x24] ss:$8 sps:$4 sm:$0xff]   ;;  %v332_v15 = vld [vmem:[%s461_s1 + $0x20] ss:$8 sps:$4 sm:$0xff]   ;;  %v333_v16 = vld [vmem:[%s461_s1 + $0x34] ss:$8 sps:$4 sm:$0xff]  }
   0x4   :  { %174 = vmatpush1.bf16.msra.mxu0 %v326_v3  ;;  %v335_v17 = vld [vmem:[%s461_s1 + $0x30] ss:$8 sps:$4 sm:$0xff]   ;;  %v336_v18 = vld [vmem:[%s461_s1 + $0x44] ss:$8 sps:$4 sm:$0xff]   ;;  %v338_v19 = vld [vmem:[%s461_s1 + $0x40] ss:$8 sps:$4 sm:$0xff]  }
   0x5   :  { %175 = vmatprep.subr.bf16.mxu0 %v327_v4  ;;  %v339_v20 = vld [vmem:[%s461_s1 + $0x54] ss:$8 sps:$4 sm:$0xff]   ;;  %v341_v22 = vld [vmem:[%s461_s1 + $0x50] ss:$8 sps:$4 sm:$0xff]   ;;  %v342_v23 = vld [vmem:[%s461_s1 + $0x64] ss:$8 sps:$4 sm:$0xff]  }
   0x6   :  { %33 = vadd.xlane.f32.xlu0 %v30_v1  ;;  %v344_v24 = vld [vmem:[%s461_s1 + $0x60] ss:$8 sps:$4 sm:$0xff]   ;;  %v345_v25 = vld [vmem:[%s461_s1 + $0x74] ss:$8 sps:$4 sm:$0xff]   ;;  %v347_v26 = vld [vmem:[%s461_s1 + $0x70] ss:$8 sps:$4 sm:$0xff]  }
   0x7   :  { %v301_v35 = vld [vmem:[%s462_s3] ss:$0 sm:$0xff]  ;;  %v234_v45 = vshrl.u32 %v233_v44, 7 }
   0x8   :  { %176 = vmatpush1.bf16.msra.mxu0 %v329_v13  ;;  %v302_v39 = vld [vmem:[%s463_s4] ss:$0 sm:$0xff] }
   0x9   :  { %177 = vmatprep.subr.bf16.mxu0 %v330_v14  ;;  %v235_v46 = vsub.s32 0, %v234_v45  ;;  %v231_v47 = vld [vmem:[%s464_s2] sm:$0x3]  ;;  %v239_v48 = vsub.s32 1, %v234_v45 }
   0xb   :  { %v236_v49 = vrot.slane %v231_v47, %v235_v46  ;;  %v240_v50 = vrot.slane %v231_v47, %v239_v48 }
   0xc   :  { %178 = vmatpush1.bf16.msra.mxu0 %v332_v15 }
   0xd   :  { %179 = vmatprep.subr.bf16.mxu0 %v333_v16 }
  0x10   :  { %180 = vmatpush1.bf16.msra.mxu0 %v335_v17 }
  0x11   :  { %181 = vmatprep.subr.bf16.mxu0 %v336_v18 }
  0x14   :  { %182 = vmatpush1.bf16.msra.mxu0 %v338_v19 }
  0x15   :  { %183 = vmatprep.subr.bf16.mxu0 %v339_v20 }
  0x18   :  { %184 = vmatpush1.bf16.msra.mxu0 %v341_v22 }
  0x19   :  { %185 = vmatprep.subr.bf16.mxu0 %v342_v23 }
  0x1c   :  { %186 = vmatpush1.bf16.msra.mxu0 %v344_v24 }
  0x1d   :  { %187 = vmatprep.subr.bf16.mxu0 %v345_v25 }
  0x20   :  { %188 = vmatpush1.bf16.msra.mxu0 %v347_v26 }
  0x8f   :  { %v32_v5 = vpop.xlane.xlu0 %31 }
  0x90   :  { %v36_v6 = vmul.f32 0.0078125, %v32_v5 }
  0x92   :  { %v38_v7 = vsub.f32 %v29_v0, %v36_v6 }
  0x93   :  { %v34_v8 = vpop.xlane.xlu0 %33 }
  0x94   :  { %v37_v9 = vmul.f32 0.0078125, %v34_v8  ;;  %v40_v10 = vmul.f32 %v38_v7, %v38_v7 }
  0x96   :  { %v39_v11 = vsub.f32 %v30_v1, %v37_v9  ;;  %42 = vadd.xlane.f32.xlu1 %v40_v10 }
  0x98   :  { %v41_v12 = vmul.f32 %v39_v11, %v39_v11 }
  0x9a   :  { %44 = vadd.xlane.f32.xlu1 %v41_v12 }
 0x123   :  { %v43_v27 = vpop.xlane.xlu1 %42 }
 0x124   :  { %v46_v28 = vmul.f32 0.0078125, %v43_v27 }
 0x126   :  { %v48_v29 = vadd.f32 1e-05, %v46_v28 }
 0x127   :  { %v45_v30 = vpop.xlane.xlu1 %44 }
 0x128   :  { %348 = vrsqrt.f32 %v48_v29  ;;  %v47_v31 = vmul.f32 0.0078125, %v45_v30 }
 0x12a   :  { %v49_v32 = vadd.f32 1e-05, %v47_v31 }
 0x12c   :  { %350 = vrsqrt.f32 %v49_v32 }
 0x132   :  { %v349_v33 = vpop.eup %348 }
 0x133   :  { %v52_v34 = vmul.f32 %v349_v33, %v38_v7 }
 0x135   :  { %v61_v38 = vmul.f32 %v301_v35, %v52_v34 }
 0x136   :  { %v351_v36 = vpop.eup %350 }
 0x137   :  { %v53_v37 = vmul.f32 %v351_v36, %v39_v11  ;;  %v70_v41 = vadd.f32 %v302_v39, %v61_v38 }
 0x139   :  { %v62_v40 = vmul.f32 %v301_v35, %v53_v37 }
 0x13b   :  { %v71_v42 = vadd.f32 %v302_v39, %v62_v40 }
 0x13d   :  { %v72_v43 = vpack.c.bf16 %v71_v42, %v70_v41 }
 0x13f   :  { %206 = vmatmul.mubr.bf16.vlgmr.msra.gmra.mrb[0].mxu0 %v72_v43 }
 0x212   :  { %v207_v51 = vpop.f32.mrb[0].mxu0 }
 0x213   :  { %v243_v52 = vadd.f32 %v236_v49, %v207_v51  ;;  %v209_v53 = vpop.f32.mrb[1].mxu0 }
 0x214   :  { %v244_v54 = vadd.f32 %v240_v50, %v209_v53  ;;  %v211_v55 = vpop.f32.mrb[2].mxu0 }
 0x215   :  { %v251_v56 = vmul.f32 0.044715, %v243_v52  ;;  %v245_v57 = vadd.f32 %v236_v49, %v211_v55  ;;  %v213_v58 = vpop.f32.mrb[3].mxu0  ;;  %v247_v17 = vmul.f32 0.5, %v243_v52 }
 0x216   :  { %v252_v59 = vmul.f32 0.044715, %v244_v54  ;;  %v246_v60 = vadd.f32 %v240_v50, %v213_v58  ;;  %v248_v20 = vmul.f32 0.5, %v244_v54 }
 0x217   :  { %v255_v61 = vmul.f32 %v251_v56, %v243_v52  ;;  %v253_v62 = vmul.f32 0.044715, %v245_v57  ;;  %v249_v24 = vmul.f32 0.5, %v245_v57 }
 0x218   :  { %v256_v63 = vmul.f32 %v252_v59, %v244_v54  ;;  %v254_v0 = vmul.f32 0.044715, %v246_v60  ;;  %v250_v27 = vmul.f32 0.5, %v246_v60 }
 0x219   :  { %v259_v1 = vmul.f32 %v255_v61, %v243_v52  ;;  %v257_v2 = vmul.f32 %v253_v62, %v245_v57 }
 0x21a   :  { %v260_v3 = vmul.f32 %v256_v63, %v244_v54  ;;  %v258_v4 = vmul.f32 %v254_v0, %v246_v60 }
 0x21b   :  { %v263_v5 = vadd.f32 %v259_v1, %v243_v52  ;;  %v261_v6 = vmul.f32 %v257_v2, %v245_v57 }
 0x21c   :  { %v264_v7 = vadd.f32 %v260_v3, %v244_v54  ;;  %v262_v8 = vmul.f32 %v258_v4, %v246_v60 }
 0x21d   :  { %v267_v9 = vmul.f32 0.7978846, %v263_v5  ;;  %v265_v10 = vadd.f32 %v261_v6, %v245_v57 }
 0x21e   :  { %v268_v11 = vmul.f32 0.7978846, %v264_v7  ;;  %v266_v12 = vadd.f32 %v262_v8, %v246_v60 }
 0x21f   :  { %352 = vtanh.f32 %v267_v9  ;;  %v269_v13 = vmul.f32 0.7978846, %v265_v10 }
 0x220   :  { %354 = vtanh.f32 %v268_v11  ;;  %v270_v14 = vmul.f32 0.7978846, %v266_v12 }
 0x221   :  { %356 = vtanh.f32 %v269_v13 }
 0x222   :  { %358 = vtanh.f32 %v270_v14 }
 0x229   :  { %v353_v15 = vpop.eup %352 }
 0x22a   :  { %v355_v16 = vpop.eup %354  ;;  %v275_v18 = vadd.f32 1.0, %v353_v15 }
 0x22b   :  { %v357_v19 = vpop.eup %356  ;;  %v276_v21 = vadd.f32 1.0, %v355_v16 }
 0x22c   :  { %v359_v22 = vpop.eup %358  ;;  %v279_v23 = vmul.f32 %v275_v18, %v247_v17  ;;  %v277_v25 = vadd.f32 1.0, %v357_v19 }
 0x22d   :  { %v280_v26 = vmul.f32 %v276_v21, %v248_v20  ;;  %v278_v28 = vadd.f32 1.0, %v359_v22 }
 0x22e   :  { %v281_v29 = vmul.f32 %v277_v25, %v249_v24 }
 0x22f   :  { %v321_v30 = vpack.c.bf16 %v280_v26, %v279_v23  ;;  %v282_v31 = vmul.f32 %v278_v28, %v250_v27 }
 0x231   :  { %295 = vst [vmem:[%s465_s5] sm:$0xff] %v321_v30  ;;  %v322_v32 = vpack.c.bf16 %v282_v31, %v281_v29 }
 0x233   :  { %296 = vst [vmem:[%s465_s5 + $0x8] sm:$0xff] %v322_v32 }

</bundles_post_ra>
